<compile_context>
chip_gen: v6e
topology: v6e:2x2x1
jax: 0.10.0
libtpu: 0.0.40
codegen_flags: <defaults>
</compile_context>

<pallas_src>
import functools
import math

import jax
import jax.numpy as jnp
from jax import lax
from jax.experimental import pallas as pl
from jax.experimental.pallas import tpu as pltpu

# ----------------------------- model config (small) -----------------------------
VOCAB = 64        # stands in for len(tokenizer) after resize_token_embeddings
HIDDEN = 32       # self.hiddenDim
N_HEADS = 2
HEAD_DIM = HIDDEN // N_HEADS
N_LAYERS = 2
INTERMEDIATE = 64
MAX_SEQ = 16
N_CLASSES = 3     # self.W = nn.Linear(hidden, 3)
LN_EPS = 1e-5


# ============================ in-kernel helper math =============================

def _ln(x, g, b, eps=LN_EPS):
    mu = jnp.mean(x, axis=-1, keepdims=True)
    var = jnp.mean((x - mu) * (x - mu), axis=-1, keepdims=True)
    return (x - mu) * lax.rsqrt(var + eps) * g + b


def _gelu(x):
    # exact erf GELU (matches PyTorch default)
    return 0.5 * x * (1.0 + lax.erf(x * (1.0 / math.sqrt(2.0))))


# ========================= fused encoder (one pallas_call) ======================

def _encoder_kernel(x_ref, maskb_ref,
                    embg_ref, embb_ref,
                    wqkv_ref, bqkv_ref, wo_ref, bo_ref,
                    ln1g_ref, ln1b_ref,
                    w1_ref, b1_ref, w2_ref, b2_ref,
                    ln2g_ref, ln2b_ref,
                    o_ref, *, bt, seq, n_heads, head_dim):
    """One grid step = one transformer layer for one batch tile.

    o_ref is the activation, resident in VMEM across the (arbitrary) layer axis.
    """
    layer = pl.program_id(1)
    d = n_heads * head_dim
    scale = 1.0 / math.sqrt(head_dim)

    # layer 0: fused embedding LayerNorm (initializes the resident activation)
    @pl.when(layer == 0)
    def _():
        o_ref[...] = _ln(x_ref[...], embg_ref[...], embb_ref[...])

    h = o_ref[...]                                               # (bt*seq, d)

    # merged QKV projection: one MXU pass, lane-dense (3d) output
    qkv = jnp.dot(h, wqkv_ref[0], preferred_element_type=jnp.float32) + bqkv_ref[0]

    maskb = maskb_ref[...]                                       # (bt, 1, seq) additive bias

    ctx_heads = []
    for hi in range(n_heads):                                    # static unroll over heads
        q = qkv[:, hi * head_dim:(hi + 1) * head_dim].reshape(bt, seq, head_dim)
        k = qkv[:, d + hi * head_dim:d + (hi + 1) * head_dim].reshape(bt, seq, head_dim)
        v = qkv[:, 2 * d + hi * head_dim:2 * d + (hi + 1) * head_dim].reshape(bt, seq, head_dim)
        s = jnp.einsum('bqd,bkd->bqk', q, k,
                       preferred_element_type=jnp.float32) * scale
        s = s + maskb                                            # key-side padding mask
        s = s - jnp.max(s, axis=-1, keepdims=True)
        p = jnp.exp(s)
        p = p * pl.reciprocal(jnp.sum(p, axis=-1, keepdims=True), approx=True)
        ctx_heads.append(jnp.einsum('bqk,bkd->bqd', p, v,
                                    preferred_element_type=jnp.float32))
    ctx = jnp.concatenate(ctx_heads, axis=-1).reshape(bt * seq, d)

    # output projection + residual + LN (post-LN, RoBERTa order)
    attn_out = jnp.dot(ctx, wo_ref[0], preferred_element_type=jnp.float32) + bo_ref[0]
    x1 = _ln(attn_out + h, ln1g_ref[0], ln1b_ref[0])

    # FFN + residual + LN, all fused in the same kernel
    ff = _gelu(jnp.dot(x1, w1_ref[0], preferred_element_type=jnp.float32) + b1_ref[0])
    ff = jnp.dot(ff, w2_ref[0], preferred_element_type=jnp.float32) + b2_ref[0]
    o_ref[...] = _ln(ff + x1, ln2g_ref[0], ln2b_ref[0])


def encoder_forward(x_emb, mask_bias, params):
    """x_emb: (B*S, D) f32 (tok+pos embeddings); mask_bias: (B, 1, S) f32 additive.

    Returns last hidden states (B*S, D).
    """
    B = mask_bias.shape[0]
    S = mask_bias.shape[2]
    D = HIDDEN
    L = N_LAYERS

    # batch tiling: parallel axis so v7x megacore shards across both TensorCores
    NB = 2 if (B % 2 == 0 and ((B // 2) * S) % 8 == 0) else 1
    BT = B // NB

    kern = functools.partial(_encoder_kernel, bt=BT, seq=S,
                             n_heads=N_HEADS, head_dim=HEAD_DIM)

    wmap = lambda b, l: (l, 0, 0)      # per-layer stacked weights
    xmap = lambda b, l: (b, 0)         # activation tile, constant across layer axis
    mmap = lambda b, l: (b, 0, 0)      # per-batch-tile mask bias
    cmap = lambda b, l: (0, 0)         # shared (embedding LN) params

    return pl.pallas_call(
        kern,
        out_shape=jax.ShapeDtypeStruct((B * S, D), jnp.float32),
        grid=(NB, L),
        in_specs=[
            pl.BlockSpec((BT * S, D), xmap),             # x_emb
            pl.BlockSpec((BT, 1, S), mmap),              # mask bias
            pl.BlockSpec((1, D), cmap),                  # emb LN gamma
            pl.BlockSpec((1, D), cmap),                  # emb LN beta
            pl.BlockSpec((1, D, 3 * D), wmap),           # wqkv
            pl.BlockSpec((1, 1, 3 * D), wmap),           # bqkv
            pl.BlockSpec((1, D, D), wmap),               # wo
            pl.BlockSpec((1, 1, D), wmap),               # bo
            pl.BlockSpec((1, 1, D), wmap),               # ln1 gamma
            pl.BlockSpec((1, 1, D), wmap),               # ln1 beta
            pl.BlockSpec((1, D, INTERMEDIATE), wmap),    # w1
            pl.BlockSpec((1, 1, INTERMEDIATE), wmap),    # b1
            pl.BlockSpec((1, INTERMEDIATE, D), wmap),    # w2
            pl.BlockSpec((1, 1, D), wmap),               # b2
            pl.BlockSpec((1, 1, D), wmap),               # ln2 gamma
            pl.BlockSpec((1, 1, D), wmap),               # ln2 beta
        ],
        out_specs=pl.BlockSpec((BT * S, D), xmap),
        compiler_params=pltpu.CompilerParams(
            dimension_semantics=("parallel", "arbitrary")),
    )(x_emb, mask_bias,
      params["emb_ln_g"], params["emb_ln_b"],
      params["wqkv"], params["bqkv"], params["wo"], params["bo"],
      params["ln1_g"], params["ln1_b"],
      params["w1"], params["b1"], params["w2"], params["b2"],
      params["ln2_g"], params["ln2_b"])


# ==================== fused heads: MLM head + URC classifier ====================

def _heads_kernel(ch_ref, cls_ref,
                  hdw_ref, hdb_ref, hlng_ref, hlnb_ref,
                  decw_ref, decb_ref, ww_ref, wb_ref,
                  mlm_ref, urc_ref):
    # MLM head on the corrupt branch: dense + GELU + LN + decoder
    h = ch_ref[...]                                              # (Bc*S, D)
    t = _gelu(jnp.dot(h, hdw_ref[...], preferred_element_type=jnp.float32) + hdb_ref[...])
    t = _ln(t, hlng_ref[...], hlnb_ref[...])
    mlm_ref[...] = jnp.dot(t, decw_ref[...],
                           preferred_element_type=jnp.float32) + decb_ref[...]
    # URC classifier W, applied only to the CLS rows
    urc_ref[...] = jnp.dot(cls_ref[...], ww_ref[...],
                           preferred_element_type=jnp.float32) + wb_ref[...]


def heads_forward(corrupt_hidden, urc_cls_hidden, params):
    M, D = corrupt_hidden.shape
    Bu = urc_cls_hidden.shape[0]
    full2 = lambda i: (0, 0)
    return pl.pallas_call(
        _heads_kernel,
        out_shape=(jax.ShapeDtypeStruct((M, VOCAB), jnp.float32),
                   jax.ShapeDtypeStruct((Bu, N_CLASSES), jnp.float32)),
        grid=(1,),
        in_specs=[
            pl.BlockSpec((M, D), full2),
            pl.BlockSpec((Bu, D), full2),
            pl.BlockSpec((D, D), full2),
            pl.BlockSpec((1, D), full2),
            pl.BlockSpec((1, D), full2),
            pl.BlockSpec((1, D), full2),
            pl.BlockSpec((D, VOCAB), full2),
            pl.BlockSpec((1, VOCAB), full2),
            pl.BlockSpec((D, N_CLASSES), full2),
            pl.BlockSpec((1, N_CLASSES), full2),
        ],
        out_specs=(pl.BlockSpec((M, VOCAB), full2),
                   pl.BlockSpec((Bu, N_CLASSES), full2)),
    )(corrupt_hidden, urc_cls_hidden,
      params["head_dense_w"], params["head_dense_b"],
      params["head_ln_g"], params["head_ln_b"],
      params["decoder_w"], params["decoder_b"],
      params["W_w"], params["W_b"])


# ============================== parameter creation ==============================

def init_params(key):
    def nrm(k, shape, scale=0.02):
        return (scale * jax.random.normal(k, shape)).astype(jnp.float32)

    D, I, L = HIDDEN, INTERMEDIATE, N_LAYERS
    keys = jax.random.split(key, 5 + L)
    p = {
        "tok_emb": nrm(keys[0], (VOCAB, D)),
        "pos_emb": nrm(keys[1], (MAX_SEQ, D)),
        "emb_ln_g": jnp.ones((1, D), jnp.float32),
        "emb_ln_b": jnp.zeros((1, D), jnp.float32),
        # MLM head
        "head_dense_w": nrm(keys[2], (D, D)),
        "head_dense_b": jnp.zeros((1, D), jnp.float32),
        "head_ln_g": jnp.ones((1, D), jnp.float32),
        "head_ln_b": jnp.zeros((1, D), jnp.float32),
        "decoder_w": nrm(keys[3], (D, VOCAB)),
        "decoder_b": jnp.zeros((1, VOCAB), jnp.float32),
        # classifier W: hidden -> 3
        "W_w": nrm(keys[4], (D, N_CLASSES)),
        "W_b": jnp.zeros((1, N_CLASSES), jnp.float32),
    }
    # per-layer weights, stacked along a leading layer axis for the fused kernel
    wqkv, bqkv, wo, bo = [], [], [], []
    ln1g, ln1b, w1, b1, w2, b2, ln2g, ln2b = [], [], [], [], [], [], [], []
    for li in range(L):
        lk = jax.random.split(keys[5 + li], 6)
        wq, wk, wv = nrm(lk[0], (D, D)), nrm(lk[1], (D, D)), nrm(lk[2], (D, D))
        wqkv.append(jnp.concatenate([wq, wk, wv], axis=1))       # (D, 3D) merged QKV
        bqkv.append(jnp.zeros((1, 3 * D), jnp.float32))
        wo.append(nrm(lk[3], (D, D)))
        bo.append(jnp.zeros((1, D), jnp.float32))
        ln1g.append(jnp.ones((1, D), jnp.float32))
        ln1b.append(jnp.zeros((1, D), jnp.float32))
        w1.append(nrm(lk[4], (D, I)))
        b1.append(jnp.zeros((1, I), jnp.float32))
        w2.append(nrm(lk[5], (I, D)))
        b2.append(jnp.zeros((1, D), jnp.float32))
        ln2g.append(jnp.ones((1, D), jnp.float32))
        ln2b.append(jnp.zeros((1, D), jnp.float32))
    p.update({
        "wqkv": jnp.stack(wqkv), "bqkv": jnp.stack(bqkv),
        "wo": jnp.stack(wo), "bo": jnp.stack(bo),
        "ln1_g": jnp.stack(ln1g), "ln1_b": jnp.stack(ln1b),
        "w1": jnp.stack(w1), "b1": jnp.stack(b1),
        "w2": jnp.stack(w2), "b2": jnp.stack(b2),
        "ln2_g": jnp.stack(ln2g), "ln2_b": jnp.stack(ln2b),
    })
    return p


# ================================ model forward =================================

def post_model_forward(params,
                       batch_corrupt_tokens,
                       batch_corrupt_mask_positions,
                       batch_urc_inputs,
                       batch_min_attentions,
                       batch_urc_attentions):
    Bc, S = batch_corrupt_tokens.shape
    Bu = batch_urc_inputs.shape[0]
    D = HIDDEN

    # both branches share the encoder weights -> single encoder pass over concat batch
    tokens = jnp.concatenate([batch_corrupt_tokens, batch_urc_inputs], axis=0)
    attn = jnp.concatenate([batch_min_attentions, batch_urc_attentions], axis=0)
    B = Bc + Bu

    # embedding lookup + learned positions (glue gather)
    x = jnp.take(params["tok_emb"], tokens, axis=0) + params["pos_emb"][:S][None, :, :]
    x = x.reshape(B * S, D).astype(jnp.float32)
    # additive key-side padding mask bias, precomputed once
    mask_bias = ((1.0 - attn.astype(jnp.float32)) * -10000.0).reshape(B, 1, S)

    hidden = encoder_forward(x, mask_bias, params).reshape(B, S, D)

    corrupt_hidden = hidden[:Bc].reshape(Bc * S, D)
    urc_cls_hidden = hidden[Bc:, 0, :]                           # CLS rows only (Bu, D)

    corrupt_logits, urc_cls_outputs = heads_forward(corrupt_hidden, urc_cls_hidden, params)
    corrupt_logits = corrupt_logits.reshape(Bc, S, VOCAB)

    # per-example <mask>-position gather (python list-of-lists, as in the reference)
    corrupt_mask_outputs = []
    for i_batch in range(len(batch_corrupt_mask_positions)):
        pos = jnp.asarray(batch_corrupt_mask_positions[i_batch], dtype=jnp.int32)
        corrupt_mask_outputs.append(corrupt_logits[i_batch, pos, :])  # (n_pos, V)

    return corrupt_mask_outputs, urc_cls_outputs


# ===================================== main =====================================

if __name__ == "__main__":
    key = jax.random.PRNGKey(0)
    kp, k1, k2 = jax.random.split(key, 3)
    params = init_params(kp)

    B, S = 2, 8
    batch_corrupt_tokens = jax.random.randint(k1, (B, S), 0, VOCAB, dtype=jnp.int32)
    batch_urc_inputs = jax.random.randint(k2, (B, S), 0, VOCAB, dtype=jnp.int32)
    # attention masks: last token of each corrupt row padded out
    batch_min_attentions = jnp.concatenate(
        [jnp.ones((B, S - 1), jnp.float32), jnp.zeros((B, 1), jnp.float32)], axis=1)
    batch_urc_attentions = jnp.ones((B, S), jnp.float32)
    # per-example <mask> positions
    batch_corrupt_mask_positions = [[1, 3], [2, 5]]

    corrupt_mask_outputs, urc_cls_outputs = post_model_forward(
        params,
        batch_corrupt_tokens,
        batch_corrupt_mask_positions,
        batch_urc_inputs,
        batch_min_attentions,
        batch_urc_attentions,
    )

    for o in corrupt_mask_outputs:
        jax.block_until_ready(o)
    jax.block_until_ready(urc_cls_outputs)

    assert corrupt_mask_outputs[0].shape == (2, VOCAB)
    assert corrupt_mask_outputs[1].shape == (2, VOCAB)
    assert urc_cls_outputs.shape == (B, N_CLASSES)
    print("KERNEL_OK")
</pallas_src>

<mosaic_0001>
module attributes {stable_mosaic.version = 11 : i64} {
  func.func @_encoder_kernel(%arg0: i32, %arg1: i32, %arg2: memref<16x32xf32, #tpu.memory_space<vmem>>, %arg3: memref<2x1x8xf32, #tpu.memory_space<vmem>>, %arg4: memref<1x32xf32, #tpu.memory_space<vmem>>, %arg5: memref<1x32xf32, #tpu.memory_space<vmem>>, %arg6: memref<1x32x96xf32, #tpu.memory_space<vmem>>, %arg7: memref<1x1x96xf32, #tpu.memory_space<vmem>>, %arg8: memref<1x32x32xf32, #tpu.memory_space<vmem>>, %arg9: memref<1x1x32xf32, #tpu.memory_space<vmem>>, %arg10: memref<1x1x32xf32, #tpu.memory_space<vmem>>, %arg11: memref<1x1x32xf32, #tpu.memory_space<vmem>>, %arg12: memref<1x32x64xf32, #tpu.memory_space<vmem>>, %arg13: memref<1x1x64xf32, #tpu.memory_space<vmem>>, %arg14: memref<1x64x32xf32, #tpu.memory_space<vmem>>, %arg15: memref<1x1x32xf32, #tpu.memory_space<vmem>>, %arg16: memref<1x1x32xf32, #tpu.memory_space<vmem>>, %arg17: memref<1x1x32xf32, #tpu.memory_space<vmem>>, %arg18: memref<16x32xf32, #tpu.memory_space<vmem>>) attributes {dimension_semantics = [#tpu.dimension_semantics<parallel>, #tpu.dimension_semantics<arbitrary>], iteration_bounds = array<i64: 2, 2>, scalar_prefetch = 0 : i64, scratch_operands = 0 : i64, tpu.core_type = #tpu.core_type<tc>, window_params = [{transform_indices = @transform_0, window_bounds = array<i64: 16, 32>}, {transform_indices = @transform_1, window_bounds = array<i64: 2, 1, 8>}, {pipeline_mode = #tpu.pipeline_mode<synchronous>, transform_indices = @transform_2, window_bounds = array<i64: 1, 32>}, {pipeline_mode = #tpu.pipeline_mode<synchronous>, transform_indices = @transform_3, window_bounds = array<i64: 1, 32>}, {transform_indices = @transform_4, window_bounds = array<i64: 1, 32, 96>}, {transform_indices = @transform_5, window_bounds = array<i64: 1, 1, 96>}, {transform_indices = @transform_6, window_bounds = array<i64: 1, 32, 32>}, {transform_indices = @transform_7, window_bounds = array<i64: 1, 1, 32>}, {transform_indices = @transform_8, window_bounds = array<i64: 1, 1, 32>}, {transform_indices = @transform_9, window_bounds = array<i64: 1, 1, 32>}, {transform_indices = @transform_10, window_bounds = array<i64: 1, 32, 64>}, {transform_indices = @transform_11, window_bounds = array<i64: 1, 1, 64>}, {transform_indices = @transform_12, window_bounds = array<i64: 1, 64, 32>}, {transform_indices = @transform_13, window_bounds = array<i64: 1, 1, 32>}, {transform_indices = @transform_14, window_bounds = array<i64: 1, 1, 32>}, {transform_indices = @transform_15, window_bounds = array<i64: 1, 1, 32>}, {transform_indices = @transform_16, window_bounds = array<i64: 16, 32>}]} {
    %c0_i32 = arith.constant 0 : i32
    %0 = arith.cmpi eq, %arg1, %c0_i32 : i32
    %1 = arith.extui %0 : i1 to i32
    %c0_i32_0 = arith.constant 0 : i32
    %2 = arith.cmpi ne, %1, %c0_i32_0 : i32
    scf.if %2 {
      %c0_69 = arith.constant 0 : index
      %c0_70 = arith.constant 0 : index
      %146 = vector.load %arg2[%c0_69, %c0_70] : memref<16x32xf32, #tpu.memory_space<vmem>>, vector<16x32xf32>
      %c0_71 = arith.constant 0 : index
      %c0_72 = arith.constant 0 : index
      %147 = vector.load %arg4[%c0_71, %c0_72] : memref<1x32xf32, #tpu.memory_space<vmem>>, vector<1x32xf32>
      %c0_73 = arith.constant 0 : index
      %c0_74 = arith.constant 0 : index
      %148 = vector.load %arg5[%c0_73, %c0_74] : memref<1x32xf32, #tpu.memory_space<vmem>>, vector<1x32xf32>
      %cst_75 = arith.constant dense<0.000000e+00> : vector<16xf32>
      %149 = vector.multi_reduction <add>, %146, %cst_75 [1] : vector<16x32xf32> to vector<16xf32>
      %150 = vector.shape_cast %149 : vector<16xf32> to vector<16x1xf32>
      %cst_76 = arith.constant 3.200000e+01 : f32
      %151 = vector.broadcast %cst_76 : f32 to vector<16x1xf32>
      %152 = arith.divf %150, %151 : vector<16x1xf32>
      %153 = vector.broadcast %152 : vector<16x1xf32> to vector<16x32xf32>
      %154 = arith.subf %146, %153 : vector<16x32xf32>
      %155 = vector.broadcast %152 : vector<16x1xf32> to vector<16x32xf32>
      %156 = arith.subf %146, %155 : vector<16x32xf32>
      %157 = arith.mulf %154, %156 : vector<16x32xf32>
      %cst_77 = arith.constant dense<0.000000e+00> : vector<16xf32>
      %158 = vector.multi_reduction <add>, %157, %cst_77 [1] : vector<16x32xf32> to vector<16xf32>
      %159 = vector.shape_cast %158 : vector<16xf32> to vector<16x1xf32>
      %cst_78 = arith.constant 3.200000e+01 : f32
      %160 = vector.broadcast %cst_78 : f32 to vector<16x1xf32>
      %161 = arith.divf %159, %160 : vector<16x1xf32>
      %162 = vector.broadcast %152 : vector<16x1xf32> to vector<16x32xf32>
      %163 = arith.subf %146, %162 : vector<16x32xf32>
      %cst_79 = arith.constant 9.99999974E-6 : f32
      %164 = vector.broadcast %cst_79 : f32 to vector<16x1xf32>
      %165 = arith.addf %161, %164 : vector<16x1xf32>
      %166 = math.rsqrt %165 : vector<16x1xf32>
      %167 = vector.broadcast %166 : vector<16x1xf32> to vector<16x32xf32>
      %168 = arith.mulf %163, %167 : vector<16x32xf32>
      %169 = vector.broadcast %147 : vector<1x32xf32> to vector<16x32xf32>
      %170 = arith.mulf %168, %169 : vector<16x32xf32>
      %171 = vector.broadcast %148 : vector<1x32xf32> to vector<16x32xf32>
      %172 = arith.addf %170, %171 : vector<16x32xf32>
      %c0_80 = arith.constant 0 : index
      %c0_81 = arith.constant 0 : index
      %173 = vector.load %arg18[%c0_80, %c0_81] : memref<16x32xf32, #tpu.memory_space<vmem>>, vector<16x32xf32>
      tpu.vector_store %arg18[%c0_80, %c0_81], %172 {strides = array<i32>} : memref<16x32xf32, #tpu.memory_space<vmem>>, vector<16x32xf32>,
    } else {
    }
    %c0 = arith.constant 0 : index
    %c0_1 = arith.constant 0 : index
    %3 = vector.load %arg18[%c0, %c0_1] : memref<16x32xf32, #tpu.memory_space<vmem>>, vector<16x32xf32>
    %c0_2 = arith.constant 0 : index
    %c0_3 = arith.constant 0 : index
    %c0_4 = arith.constant 0 : index
    %4 = vector.load %arg6[%c0_2, %c0_3, %c0_4] : memref<1x32x96xf32, #tpu.memory_space<vmem>>, vector<1x32x96xf32>
    %5 = vector.shape_cast %4 : vector<1x32x96xf32> to vector<32x96xf32>
    %cst = arith.constant dense<0.000000e+00> : vector<16x96xf32>
    %6 = tpu.matmul %3, %5, %cst {dimension_numbers = #tpu.dot_dimension_numbers<[1], [0], [0], [1], [0, 0, 1, 1], [], []>} : vector<16x32xf32>, vector<32x96xf32>, vector<16x96xf32> -> vector<16x96xf32>
    %c0_5 = arith.constant 0 : index
    %c0_6 = arith.constant 0 : index
    %c0_7 = arith.constant 0 : index
    %7 = vector.load %arg7[%c0_5, %c0_6, %c0_7] : memref<1x1x96xf32, #tpu.memory_space<vmem>>, vector<1x1x96xf32>
    %8 = vector.shape_cast %7 : vector<1x1x96xf32> to vector<1x96xf32>
    %9 = vector.broadcast %8 : vector<1x96xf32> to vector<16x96xf32>
    %10 = arith.addf %6, %9 : vector<16x96xf32>
    %c0_8 = arith.constant 0 : index
    %c0_9 = arith.constant 0 : index
    %c0_10 = arith.constant 0 : index
    %11 = vector.load %arg3[%c0_8, %c0_9, %c0_10] : memref<2x1x8xf32, #tpu.memory_space<vmem>>, vector<2x1x8xf32>
    %12 = vector.extract_strided_slice %10 {offsets = [0, 0], sizes = [16, 16], strides = [1, 1]} : vector<16x96xf32> to vector<16x16xf32>
    %13 = vector.shape_cast %12 : vector<16x16xf32> to vector<2x8x16xf32>
    %14 = vector.extract_strided_slice %10 {offsets = [0, 32], sizes = [16, 16], strides = [1, 1]} : vector<16x96xf32> to vector<16x16xf32>
    %15 = vector.shape_cast %14 : vector<16x16xf32> to vector<2x8x16xf32>
    %16 = vector.extract_strided_slice %10 {offsets = [0, 64], sizes = [16, 16], strides = [1, 1]} : vector<16x96xf32> to vector<16x16xf32>
    %17 = vector.shape_cast %16 : vector<16x16xf32> to vector<2x8x16xf32>
    "tpu.trace_start"() <{level = 10 : i32, message = "bqd,bkd->bqk"}> : () -> ()
    %cst_11 = arith.constant dense<0.000000e+00> : vector<2x8x8xf32>
    %18 = tpu.matmul %13, %15, %cst_11 {dimension_numbers = #tpu.dot_dimension_numbers<[2], [2], [1], [1], [0, 0, 0, 1, 1, 1], [0], [0]>} : vector<2x8x16xf32>, vector<2x8x16xf32>, vector<2x8x8xf32> -> vector<2x8x8xf32>
    "tpu.trace_stop"() : () -> ()
    %cst_12 = arith.constant 2.500000e-01 : f32
    %19 = vector.broadcast %cst_12 : f32 to vector<2x8x8xf32>
    %20 = arith.mulf %18, %19 : vector<2x8x8xf32>
    %21 = vector.broadcast %11 : vector<2x1x8xf32> to vector<2x8x8xf32>
    %22 = arith.addf %20, %21 : vector<2x8x8xf32>
    %cst_13 = arith.constant dense<0xFF800000> : vector<2x8xf32>
    %23 = vector.multi_reduction <maximumf>, %22, %cst_13 [2] : vector<2x8x8xf32> to vector<2x8xf32>
    %24 = vector.shape_cast %23 : vector<2x8xf32> to vector<2x8x1xf32>
    %25 = vector.broadcast %24 : vector<2x8x1xf32> to vector<2x8x8xf32>
    %26 = arith.subf %22, %25 : vector<2x8x8xf32>
    %27 = math.exp %26 : vector<2x8x8xf32>
    %cst_14 = arith.constant dense<0.000000e+00> : vector<2x8xf32>
    %28 = vector.multi_reduction <add>, %27, %cst_14 [2] : vector<2x8x8xf32> to vector<2x8xf32>
    %29 = vector.shape_cast %28 : vector<2x8xf32> to vector<2x8x1xf32>
    %30 = tpu.reciprocal %29 {approx = true} : vector<2x8x1xf32> -> vector<2x8x1xf32>
    %31 = vector.broadcast %30 : vector<2x8x1xf32> to vector<2x8x8xf32>
    %32 = arith.mulf %27, %31 : vector<2x8x8xf32>
    "tpu.trace_start"() <{level = 10 : i32, message = "bqk,bkd->bqd"}> : () -> ()
    %cst_15 = arith.constant dense<0.000000e+00> : vector<2x8x16xf32>
    %33 = tpu.matmul %32, %17, %cst_15 {dimension_numbers = #tpu.dot_dimension_numbers<[2], [1], [1], [2], [0, 0, 0, 1, 1, 2], [0], [0]>} : vector<2x8x8xf32>, vector<2x8x16xf32>, vector<2x8x16xf32> -> vector<2x8x16xf32>
    "tpu.trace_stop"() : () -> ()
    %34 = vector.extract_strided_slice %10 {offsets = [0, 16], sizes = [16, 16], strides = [1, 1]} : vector<16x96xf32> to vector<16x16xf32>
    %35 = vector.shape_cast %34 : vector<16x16xf32> to vector<2x8x16xf32>
    %36 = vector.extract_strided_slice %10 {offsets = [0, 48], sizes = [16, 16], strides = [1, 1]} : vector<16x96xf32> to vector<16x16xf32>
    %37 = vector.shape_cast %36 : vector<16x16xf32> to vector<2x8x16xf32>
    %38 = vector.extract_strided_slice %10 {offsets = [0, 80], sizes = [16, 16], strides = [1, 1]} : vector<16x96xf32> to vector<16x16xf32>
    %39 = vector.shape_cast %38 : vector<16x16xf32> to vector<2x8x16xf32>
    "tpu.trace_start"() <{level = 10 : i32, message = "bqd,bkd->bqk"}> : () -> ()
    %cst_16 = arith.constant dense<0.000000e+00> : vector<2x8x8xf32>
    %40 = tpu.matmul %35, %37, %cst_16 {dimension_numbers = #tpu.dot_dimension_numbers<[2], [2], [1], [1], [0, 0, 0, 1, 1, 1], [0], [0]>} : vector<2x8x16xf32>, vector<2x8x16xf32>, vector<2x8x8xf32> -> vector<2x8x8xf32>
    "tpu.trace_stop"() : () -> ()
    %cst_17 = arith.constant 2.500000e-01 : f32
    %41 = vector.broadcast %cst_17 : f32 to vector<2x8x8xf32>
    %42 = arith.mulf %40, %41 : vector<2x8x8xf32>
    %43 = vector.broadcast %11 : vector<2x1x8xf32> to vector<2x8x8xf32>
    %44 = arith.addf %42, %43 : vector<2x8x8xf32>
    %cst_18 = arith.constant dense<0xFF800000> : vector<2x8xf32>
    %45 = vector.multi_reduction <maximumf>, %44, %cst_18 [2] : vector<2x8x8xf32> to vector<2x8xf32>
    %46 = vector.shape_cast %45 : vector<2x8xf32> to vector<2x8x1xf32>
    %47 = vector.broadcast %46 : vector<2x8x1xf32> to vector<2x8x8xf32>
    %48 = arith.subf %44, %47 : vector<2x8x8xf32>
    %49 = math.exp %48 : vector<2x8x8xf32>
    %cst_19 = arith.constant dense<0.000000e+00> : vector<2x8xf32>
    %50 = vector.multi_reduction <add>, %49, %cst_19 [2] : vector<2x8x8xf32> to vector<2x8xf32>
    %51 = vector.shape_cast %50 : vector<2x8xf32> to vector<2x8x1xf32>
    %52 = tpu.reciprocal %51 {approx = true} : vector<2x8x1xf32> -> vector<2x8x1xf32>
    %53 = vector.broadcast %52 : vector<2x8x1xf32> to vector<2x8x8xf32>
    %54 = arith.mulf %49, %53 : vector<2x8x8xf32>
    "tpu.trace_start"() <{level = 10 : i32, message = "bqk,bkd->bqd"}> : () -> ()
    %cst_20 = arith.constant dense<0.000000e+00> : vector<2x8x16xf32>
    %55 = tpu.matmul %54, %39, %cst_20 {dimension_numbers = #tpu.dot_dimension_numbers<[2], [1], [1], [2], [0, 0, 0, 1, 1, 2], [0], [0]>} : vector<2x8x8xf32>, vector<2x8x16xf32>, vector<2x8x16xf32> -> vector<2x8x16xf32>
    "tpu.trace_stop"() : () -> ()
    %56 = tpu.concatenate %33, %55 in 2 : vector<2x8x16xf32>, vector<2x8x16xf32> -> vector<2x8x32xf32>
    %57 = vector.shape_cast %56 : vector<2x8x32xf32> to vector<16x32xf32>
    %c0_21 = arith.constant 0 : index
    %c0_22 = arith.constant 0 : index
    %c0_23 = arith.constant 0 : index
    %58 = vector.load %arg8[%c0_21, %c0_22, %c0_23] : memref<1x32x32xf32, #tpu.memory_space<vmem>>, vector<1x32x32xf32>
    %59 = vector.shape_cast %58 : vector<1x32x32xf32> to vector<32x32xf32>
    %cst_24 = arith.constant dense<0.000000e+00> : vector<16x32xf32>
    %60 = tpu.matmul %57, %59, %cst_24 {dimension_numbers = #tpu.dot_dimension_numbers<[1], [0], [0], [1], [0, 0, 1, 1], [], []>} : vector<16x32xf32>, vector<32x32xf32>, vector<16x32xf32> -> vector<16x32xf32>
    %c0_25 = arith.constant 0 : index
    %c0_26 = arith.constant 0 : index
    %c0_27 = arith.constant 0 : index
    %61 = vector.load %arg9[%c0_25, %c0_26, %c0_27] : memref<1x1x32xf32, #tpu.memory_space<vmem>>, vector<1x1x32xf32>
    %62 = vector.shape_cast %61 : vector<1x1x32xf32> to vector<1x32xf32>
    %63 = vector.broadcast %62 : vector<1x32xf32> to vector<16x32xf32>
    %64 = arith.addf %60, %63 : vector<16x32xf32>
    %65 = arith.addf %64, %3 : vector<16x32xf32>
    %c0_28 = arith.constant 0 : index
    %c0_29 = arith.constant 0 : index
    %c0_30 = arith.constant 0 : index
    %66 = vector.load %arg10[%c0_28, %c0_29, %c0_30] : memref<1x1x32xf32, #tpu.memory_space<vmem>>, vector<1x1x32xf32>
    %67 = vector.shape_cast %66 : vector<1x1x32xf32> to vector<1x32xf32>
    %c0_31 = arith.constant 0 : index
    %c0_32 = arith.constant 0 : index
    %c0_33 = arith.constant 0 : index
    %68 = vector.load %arg11[%c0_31, %c0_32, %c0_33] : memref<1x1x32xf32, #tpu.memory_space<vmem>>, vector<1x1x32xf32>
    %69 = vector.shape_cast %68 : vector<1x1x32xf32> to vector<1x32xf32>
    %cst_34 = arith.constant dense<0.000000e+00> : vector<16xf32>
    %70 = vector.multi_reduction <add>, %65, %cst_34 [1] : vector<16x32xf32> to vector<16xf32>
    %71 = vector.shape_cast %70 : vector<16xf32> to vector<16x1xf32>
    %cst_35 = arith.constant 3.200000e+01 : f32
    %72 = vector.broadcast %cst_35 : f32 to vector<16x1xf32>
    %73 = arith.divf %71, %72 : vector<16x1xf32>
    %74 = vector.broadcast %73 : vector<16x1xf32> to vector<16x32xf32>
    %75 = arith.subf %65, %74 : vector<16x32xf32>
    %76 = vector.broadcast %73 : vector<16x1xf32> to vector<16x32xf32>
    %77 = arith.subf %65, %76 : vector<16x32xf32>
    %78 = arith.mulf %75, %77 : vector<16x32xf32>
    %cst_36 = arith.constant dense<0.000000e+00> : vector<16xf32>
    %79 = vector.multi_reduction <add>, %78, %cst_36 [1] : vector<16x32xf32> to vector<16xf32>
    %80 = vector.shape_cast %79 : vector<16xf32> to vector<16x1xf32>
    %cst_37 = arith.constant 3.200000e+01 : f32
    %81 = vector.broadcast %cst_37 : f32 to vector<16x1xf32>
    %82 = arith.divf %80, %81 : vector<16x1xf32>
    %83 = vector.broadcast %73 : vector<16x1xf32> to vector<16x32xf32>
    %84 = arith.subf %65, %83 : vector<16x32xf32>
    %cst_38 = arith.constant 9.99999974E-6 : f32
    %85 = vector.broadcast %cst_38 : f32 to vector<16x1xf32>
    %86 = arith.addf %82, %85 : vector<16x1xf32>
    %87 = math.rsqrt %86 : vector<16x1xf32>
    %88 = vector.broadcast %87 : vector<16x1xf32> to vector<16x32xf32>
    %89 = arith.mulf %84, %88 : vector<16x32xf32>
    %90 = vector.broadcast %67 : vector<1x32xf32> to vector<16x32xf32>
    %91 = arith.mulf %89, %90 : vector<16x32xf32>
    %92 = vector.broadcast %69 : vector<1x32xf32> to vector<16x32xf32>
    %93 = arith.addf %91, %92 : vector<16x32xf32>
    %c0_39 = arith.constant 0 : index
    %c0_40 = arith.constant 0 : index
    %c0_41 = arith.constant 0 : index
    %94 = vector.load %arg12[%c0_39, %c0_40, %c0_41] : memref<1x32x64xf32, #tpu.memory_space<vmem>>, vector<1x32x64xf32>
    %95 = vector.shape_cast %94 : vector<1x32x64xf32> to vector<32x64xf32>
    %cst_42 = arith.constant dense<0.000000e+00> : vector<16x64xf32>
    %96 = tpu.matmul %93, %95, %cst_42 {dimension_numbers = #tpu.dot_dimension_numbers<[1], [0], [0], [1], [0, 0, 1, 1], [], []>} : vector<16x32xf32>, vector<32x64xf32>, vector<16x64xf32> -> vector<16x64xf32>
    %c0_43 = arith.constant 0 : index
    %c0_44 = arith.constant 0 : index
    %c0_45 = arith.constant 0 : index
    %97 = vector.load %arg13[%c0_43, %c0_44, %c0_45] : memref<1x1x64xf32, #tpu.memory_space<vmem>>, vector<1x1x64xf32>
    %98 = vector.shape_cast %97 : vector<1x1x64xf32> to vector<1x64xf32>
    %99 = vector.broadcast %98 : vector<1x64xf32> to vector<16x64xf32>
    %100 = arith.addf %96, %99 : vector<16x64xf32>
    %cst_46 = arith.constant 5.000000e-01 : f32
    %101 = vector.broadcast %cst_46 : f32 to vector<16x64xf32>
    %102 = arith.mulf %101, %100 : vector<16x64xf32>
    %cst_47 = arith.constant 0.707106769 : f32
    %103 = vector.broadcast %cst_47 : f32 to vector<16x64xf32>
    %104 = arith.mulf %100, %103 : vector<16x64xf32>
    %105 = math.erf %104 : vector<16x64xf32>
    %cst_48 = arith.constant 1.000000e+00 : f32
    %106 = vector.broadcast %cst_48 : f32 to vector<16x64xf32>
    %107 = arith.addf %106, %105 : vector<16x64xf32>
    %108 = arith.mulf %102, %107 : vector<16x64xf32>
    %c0_49 = arith.constant 0 : index
    %c0_50 = arith.constant 0 : index
    %c0_51 = arith.constant 0 : index
    %109 = vector.load %arg14[%c0_49, %c0_50, %c0_51] : memref<1x64x32xf32, #tpu.memory_space<vmem>>, vector<1x64x32xf32>
    %110 = vector.shape_cast %109 : vector<1x64x32xf32> to vector<64x32xf32>
    %cst_52 = arith.constant dense<0.000000e+00> : vector<16x32xf32>
    %111 = tpu.matmul %108, %110, %cst_52 {dimension_numbers = #tpu.dot_dimension_numbers<[1], [0], [0], [1], [0, 0, 1, 1], [], []>} : vector<16x64xf32>, vector<64x32xf32>, vector<16x32xf32> -> vector<16x32xf32>
    %c0_53 = arith.constant 0 : index
    %c0_54 = arith.constant 0 : index
    %c0_55 = arith.constant 0 : index
    %112 = vector.load %arg15[%c0_53, %c0_54, %c0_55] : memref<1x1x32xf32, #tpu.memory_space<vmem>>, vector<1x1x32xf32>
    %113 = vector.shape_cast %112 : vector<1x1x32xf32> to vector<1x32xf32>
    %114 = vector.broadcast %113 : vector<1x32xf32> to vector<16x32xf32>
    %115 = arith.addf %111, %114 : vector<16x32xf32>
    %116 = arith.addf %115, %93 : vector<16x32xf32>
    %c0_56 = arith.constant 0 : index
    %c0_57 = arith.constant 0 : index
    %c0_58 = arith.constant 0 : index
    %117 = vector.load %arg16[%c0_56, %c0_57, %c0_58] : memref<1x1x32xf32, #tpu.memory_space<vmem>>, vector<1x1x32xf32>
    %118 = vector.shape_cast %117 : vector<1x1x32xf32> to vector<1x32xf32>
    %c0_59 = arith.constant 0 : index
    %c0_60 = arith.constant 0 : index
    %c0_61 = arith.constant 0 : index
    %119 = vector.load %arg17[%c0_59, %c0_60, %c0_61] : memref<1x1x32xf32, #tpu.memory_space<vmem>>, vector<1x1x32xf32>
    %120 = vector.shape_cast %119 : vector<1x1x32xf32> to vector<1x32xf32>
    %cst_62 = arith.constant dense<0.000000e+00> : vector<16xf32>
    %121 = vector.multi_reduction <add>, %116, %cst_62 [1] : vector<16x32xf32> to vector<16xf32>
    %122 = vector.shape_cast %121 : vector<16xf32> to vector<16x1xf32>
    %cst_63 = arith.constant 3.200000e+01 : f32
    %123 = vector.broadcast %cst_63 : f32 to vector<16x1xf32>
    %124 = arith.divf %122, %123 : vector<16x1xf32>
    %125 = vector.broadcast %124 : vector<16x1xf32> to vector<16x32xf32>
    %126 = arith.subf %116, %125 : vector<16x32xf32>
    %127 = vector.broadcast %124 : vector<16x1xf32> to vector<16x32xf32>
    %128 = arith.subf %116, %127 : vector<16x32xf32>
    %129 = arith.mulf %126, %128 : vector<16x32xf32>
    %cst_64 = arith.constant dense<0.000000e+00> : vector<16xf32>
    %130 = vector.multi_reduction <add>, %129, %cst_64 [1] : vector<16x32xf32> to vector<16xf32>
    %131 = vector.shape_cast %130 : vector<16xf32> to vector<16x1xf32>
    %cst_65 = arith.constant 3.200000e+01 : f32
    %132 = vector.broadcast %cst_65 : f32 to vector<16x1xf32>
    %133 = arith.divf %131, %132 : vector<16x1xf32>
    %134 = vector.broadcast %124 : vector<16x1xf32> to vector<16x32xf32>
    %135 = arith.subf %116, %134 : vector<16x32xf32>
    %cst_66 = arith.constant 9.99999974E-6 : f32
    %136 = vector.broadcast %cst_66 : f32 to vector<16x1xf32>
    %137 = arith.addf %133, %136 : vector<16x1xf32>
    %138 = math.rsqrt %137 : vector<16x1xf32>
    %139 = vector.broadcast %138 : vector<16x1xf32> to vector<16x32xf32>
    %140 = arith.mulf %135, %139 : vector<16x32xf32>
    %141 = vector.broadcast %118 : vector<1x32xf32> to vector<16x32xf32>
    %142 = arith.mulf %140, %141 : vector<16x32xf32>
    %143 = vector.broadcast %120 : vector<1x32xf32> to vector<16x32xf32>
    %144 = arith.addf %142, %143 : vector<16x32xf32>
    %c0_67 = arith.constant 0 : index
    %c0_68 = arith.constant 0 : index
    %145 = vector.load %arg18[%c0_67, %c0_68] : memref<16x32xf32, #tpu.memory_space<vmem>>, vector<16x32xf32>
    tpu.vector_store %arg18[%c0_67, %c0_68], %144 {strides = array<i32>} : memref<16x32xf32, #tpu.memory_space<vmem>>, vector<16x32xf32>,
    return
  }
  func.func @transform_0(%arg0: i32, %arg1: i32) -> (i32, i32) {
    %c0_i32 = arith.constant 0 : i32
    %c0_i32_0 = arith.constant 0 : i32
    return %arg0, %c0_i32 : i32, i32
  }
  func.func @transform_1(%arg0: i32, %arg1: i32) -> (i32, i32, i32) {
    %c0_i32 = arith.constant 0 : i32
    %c0_i32_0 = arith.constant 0 : i32
    %c0_i32_1 = arith.constant 0 : i32
    return %arg0, %c0_i32, %c0_i32_0 : i32, i32, i32
  }
  func.func @transform_2(%arg0: i32, %arg1: i32) -> (i32, i32) {
    %c0_i32 = arith.constant 0 : i32
    %c0_i32_0 = arith.constant 0 : i32
    %c0_i32_1 = arith.constant 0 : i32
    return %c0_i32, %c0_i32_0 : i32, i32
  }
  func.func @transform_3(%arg0: i32, %arg1: i32) -> (i32, i32) {
    %c0_i32 = arith.constant 0 : i32
    %c0_i32_0 = arith.constant 0 : i32
    %c0_i32_1 = arith.constant 0 : i32
    return %c0_i32, %c0_i32_0 : i32, i32
  }
  func.func @transform_4(%arg0: i32, %arg1: i32) -> (i32, i32, i32) {
    %c0_i32 = arith.constant 0 : i32
    %c0_i32_0 = arith.constant 0 : i32
    %c0_i32_1 = arith.constant 0 : i32
    return %arg1, %c0_i32, %c0_i32_0 : i32, i32, i32
  }
  func.func @transform_5(%arg0: i32, %arg1: i32) -> (i32, i32, i32) {
    %c0_i32 = arith.constant 0 : i32
    %c0_i32_0 = arith.constant 0 : i32
    %c0_i32_1 = arith.constant 0 : i32
    return %arg1, %c0_i32, %c0_i32_0 : i32, i32, i32
  }
  func.func @transform_6(%arg0: i32, %arg1: i32) -> (i32, i32, i32) {
    %c0_i32 = arith.constant 0 : i32
    %c0_i32_0 = arith.constant 0 : i32
    %c0_i32_1 = arith.constant 0 : i32
    return %arg1, %c0_i32, %c0_i32_0 : i32, i32, i32
  }
  func.func @transform_7(%arg0: i32, %arg1: i32) -> (i32, i32, i32) {
    %c0_i32 = arith.constant 0 : i32
    %c0_i32_0 = arith.constant 0 : i32
    %c0_i32_1 = arith.constant 0 : i32
    return %arg1, %c0_i32, %c0_i32_0 : i32, i32, i32
  }
  func.func @transform_8(%arg0: i32, %arg1: i32) -> (i32, i32, i32) {
    %c0_i32 = arith.constant 0 : i32
    %c0_i32_0 = arith.constant 0 : i32
    %c0_i32_1 = arith.constant 0 : i32
    return %arg1, %c0_i32, %c0_i32_0 : i32, i32, i32
  }
  func.func @transform_9(%arg0: i32, %arg1: i32) -> (i32, i32, i32) {
    %c0_i32 = arith.constant 0 : i32
    %c0_i32_0 = arith.constant 0 : i32
    %c0_i32_1 = arith.constant 0 : i32
    return %arg1, %c0_i32, %c0_i32_0 : i32, i32, i32
  }
  func.func @transform_10(%arg0: i32, %arg1: i32) -> (i32, i32, i32) {
    %c0_i32 = arith.constant 0 : i32
    %c0_i32_0 = arith.constant 0 : i32
    %c0_i32_1 = arith.constant 0 : i32
    return %arg1, %c0_i32, %c0_i32_0 : i32, i32, i32
  }
  func.func @transform_11(%arg0: i32, %arg1: i32) -> (i32, i32, i32) {
    %c0_i32 = arith.constant 0 : i32
    %c0_i32_0 = arith.constant 0 : i32
    %c0_i32_1 = arith.constant 0 : i32
    return %arg1, %c0_i32, %c0_i32_0 : i32, i32, i32
  }
  func.func @transform_12(%arg0: i32, %arg1: i32) -> (i32, i32, i32) {
    %c0_i32 = arith.constant 0 : i32
    %c0_i32_0 = arith.constant 0 : i32
    %c0_i32_1 = arith.constant 0 : i32
    return %arg1, %c0_i32, %c0_i32_0 : i32, i32, i32
  }
  func.func @transform_13(%arg0: i32, %arg1: i32) -> (i32, i32, i32) {
    %c0_i32 = arith.constant 0 : i32
    %c0_i32_0 = arith.constant 0 : i32
    %c0_i32_1 = arith.constant 0 : i32
    return %arg1, %c0_i32, %c0_i32_0 : i32, i32, i32
  }
  func.func @transform_14(%arg0: i32, %arg1: i32) -> (i32, i32, i32) {
    %c0_i32 = arith.constant 0 : i32
    %c0_i32_0 = arith.constant 0 : i32
    %c0_i32_1 = arith.constant 0 : i32
    return %arg1, %c0_i32, %c0_i32_0 : i32, i32, i32
  }
  func.func @transform_15(%arg0: i32, %arg1: i32) -> (i32, i32, i32) {
    %c0_i32 = arith.constant 0 : i32
    %c0_i32_0 = arith.constant 0 : i32
    %c0_i32_1 = arith.constant 0 : i32
    return %arg1, %c0_i32, %c0_i32_0 : i32, i32, i32
  }
  func.func @transform_16(%arg0: i32, %arg1: i32) -> (i32, i32) {
    %c0_i32 = arith.constant 0 : i32
    %c0_i32_0 = arith.constant 0 : i32
    return %arg0, %c0_i32 : i32, i32
  }
}

</mosaic_0001>

<bundles_post_ra>
// kernel: tpu_custom_call.1
= control target key start
LH: loop header
LB: loop body
LE: loop exit
PB: predicated region body
PF: predicated region fallthrough
CT: control target
= control target key end

     0   :  { %s3467_s0 = inlined_call_operand.hbm [shape: f32[32,32], index: 0, kind: input, shape index: {}]   ;;  %s3468_s1 = inlined_call_operand.hbm [shape: f32[4,1,8], index: 1, kind: input, shape index: {}]   ;;  %s3469_s2 = inlined_call_operand.hbm [shape: f32[1,32], index: 2, kind: input, shape index: {}]   ;;  %s3470_s3 = inlined_call_operand.hbm [shape: f32[1,32], index: 3, kind: input, shape index: {}]   ;;  %s3471_s4 = inlined_call_operand.vmem [shape: f32[2,32,96], index: 4, kind: input, shape index: {}]   ;;  %s3472_s5 = inlined_call_operand.vmem [shape: f32[2,1,96], index: 5, kind: input, shape index: {}]   ;;  %s3473_s6 = inlined_call_operand.vmem [shape: f32[2,32,32], index: 6, kind: input, shape index: {}]   ;;  %s3474_s7 = inlined_call_operand.vmem [shape: f32[2,1,32], index: 7, kind: input, shape index: {}]   ;;  %s3475_s8 = inlined_call_operand.vmem [shape: f32[2,1,32], index: 8, kind: input, shape index: {}]   ;;  %s3476_s9 = inlined_call_operand.vmem [shape: f32[2,1,32], index: 9, kind: input, shape index: {}]   ;;  %s3477_s10 = inlined_call_operand.vmem [shape: f32[2,32,64], index: 10, kind: input, shape index: {}]   ;;  %s3478_s11 = inlined_call_operand.vmem [shape: f32[2,1,64], index: 11, kind: input, shape index: {}]   ;;  %s3479_s12 = inlined_call_operand.vmem [shape: f32[2,64,32], index: 12, kind: input, shape index: {}]   ;;  %s3480_s13 = inlined_call_operand.vmem [shape: f32[2,1,32], index: 13, kind: input, shape index: {}]   ;;  %s3481_s14 = inlined_call_operand.vmem [shape: f32[2,1,32], index: 14, kind: input, shape index: {}]   ;;  %s3482_s15 = inlined_call_operand.vmem [shape: f32[2,1,32], index: 15, kind: input, shape index: {}]   ;;  %s3483_s16 = inlined_call_operand.hbm [shape: f32[32,32], index: 16, kind: output, shape index: {}]  }
   0x1   :  { %3500 = sst [smem:[#allocation27_spill]] %s3467_s0 }
   0x2   :  { %3501 = sst [smem:[#allocation28_spill]] %s3468_s1 }
   0x3   :  { %3502 = sst [smem:[#allocation29_spill]] %s3469_s2 }
   0x4   :  { %3503 = sst [smem:[#allocation30_spill]] %s3470_s3 }
   0x5   :  { %3504 = sst [smem:[#allocation31_spill]] %s3471_s4 }
   0x6   :  { %3505 = sst [smem:[#allocation32_spill]] %s3473_s6 }
   0x7   :  { %3506 = sst [smem:[#allocation33_spill]] %s3474_s7 }
   0x8   :  { %3507 = sst [smem:[#allocation34_spill]] %s3475_s8 }
   0x9   :  { %3508 = sst [smem:[#allocation35_spill]] %s3476_s9 }
   0xa   :  { %3509 = sst [smem:[#allocation36_spill]] %s3477_s10 }
   0xb   :  { %3510 = sst [smem:[#allocation37_spill]] %s3478_s11 }
   0xc   :  { %3511 = sst [smem:[#allocation38_spill]] %s3479_s12 }
   0xd   :  { %3512 = sst [smem:[#allocation39_spill]] %s3480_s13 }
   0xe   :  { %3513 = sst [smem:[#allocation40_spill]] %s3481_s14 }
   0xf   :  { %3514 = sst [smem:[#allocation41_spill]] %s3482_s15 }
  0x10   :  { %3515 = sst [smem:[#allocation42_spill]] %s3483_s16 }
  0x11   :  { %21 = vsyncpa [#allocation3], 0 }
  0x12   :  { %23 = vsyncpa [#allocation3 + $0x1], 0 }
  0x13   :  { %24 = vsyncpa [#allocation6], 0 }
  0x14   :  { %26 = vsyncpa [#allocation6 + $0x1], 0 }
  0x15   :  { %27 = vsyncpa [#allocation9], 0 }
  0x16   :  { %28 = vsyncpa [#allocation4], 0 }
  0x17   :  { %30 = vsyncpa [#allocation4 + $0x1], 0  ;;  %s2978_s21 = smov 0   ;;  %s2980_s22 = smov 0  }
  0x18   :  { %s2982_s23 = smov 0   ;;  %s2984_s24 = smov 0  }
  0x19   :  { %s2986_s25 = smov 0   ;;  %s2988_s26 = smov 0  }
  0x1a   :  { %s2990_s27 = smov 0   ;;  %s2992_s28 = smov 0  }
  0x1b LB: > { %3516 = sst [smem:[#allocation16_spill]] %s2844_s21  ;;  %s3019_s29 = sadd.s32 4294967295, %s2872_s28   ;;  %s2872_s28 = sphi %s2992_s28, %s36_s28   ;;  %s2868_s27 = sphi %s2990_s27, %s3582_s27   ;;  %s2864_s26 = sphi %s2988_s26, %s3581_s26   ;;  %s2860_s25 = sphi %s2986_s25, %s3580_s25   ;;  %s2856_s24 = sphi %s2984_s24, %s3579_s24   ;;  %s2852_s23 = sphi %s2982_s23, %s3578_s23   ;;  %s2848_s22 = sphi %s2980_s22, %s3584_s22   ;;  %s2844_s21 = sphi %s2978_s21, %s3583_s21  }
  0x1c   : > { %3517 = sst [smem:[#allocation17_spill]] %s2852_s23  ;;  %s2300_s30 = sadd.s32 4294967294, %s2872_s28  }
  0x1d   : > { %3518 = sst [smem:[#allocation18_spill]] %s2860_s25  ;;  %p62_p0 = scmp.ne.s32.totalorder %s2852_s23, %s2848_s22 }
  0x1e   : > { %3519 = sst [smem:[#allocation19_spill]] %s2864_s26  ;;  %p63_p1 = scmp.eq.s32.totalorder %s2872_s28, 0 }
  0x1f   : > { %3520 = sst [smem:[#allocation20_spill]] %s2868_s27  ;;  %p68_p2 = scmp.ne.s32.totalorder %s2848_s22, %s2844_s21 }
  0x20   : > { %3521 = sst [smem:[#allocation21_spill]] %s2872_s28  ;;  %p3490_p3 = scmp.eq.s32.totalorder %s3019_s29, 0 }
  0x21   : > { %p472_p4 = scmp.eq.s32.totalorder %s3019_s29, 3  ;;  %p3030_p5 = por %p63_p1, %p62_p0 }
  0x22   : > { %p478_p6 = scmp.eq.s32.totalorder %s2300_s30, 3  ;;  %p3036_p7 = por %p3490_p3, %p68_p2 }
  0x23   : > { %p3040_p8 = por %p472_p4, %p62_p0  ;;  %p2301_p10 = scmp.ge.s32.totalorder %s2872_s28, 1 }
  0x24   : > { %s3523_s18 = scalar_select %p3036_p7, 1, 0 }
  0x25   : > { %s3524_s19 = scalar_select %p3040_p8, 1, 0 }
  0x26   : > { %p3044_p9 = por %p478_p6, %p68_p2  ;;  %p485_p11 = scmp.lt.s32.totalorder %s2872_s28, 5 }
  0x27   : > { %3525 = sst [smem:[#allocation22_spill]] %s3524_s19  ;;  %s2874_s30 = smov [#allocation7]  }
  0x28   : > { %s3526_s20 = scalar_select %p3044_p9, 1, 0 }
  0x29   : > { %p3050_p12 = pnand %p2301_p10, %p485_p11  ;;  %s498_s21 = sshll.u32 %s2874_s30, 4  ;;  %s499_s21 = int_to_ptr.vmem [resolvable:$true] %s498_s21 }
  0x2a   : > { %3527 = sst [smem:[#allocation23_spill]] %s3526_s20  ;;  %p2540_p13 = scmp.lt.s32.totalorder %s2872_s28, 4 }
  0x2b   : > { %s3528_s0 = scalar_select %p3050_p12, 1, 0 }
  0x2c   : > { %p2520_p0 = pneg %p3050_p12  ;;  %p3059_p1 = pnand %p2540_p13, %p3030_p5 }
  0x2d   : > { %s2875_s19 = smov [#allocation8]   ;;  %s2667_s30 = scalar_lea.vmem %s499_s21, 16 }
  0x2e   : > { %s509_s20 = sshll.u32 %s2875_s19, 4  ;;  %p3065_p2 = pnand %p2520_p0, %p3490_p3  ;;  %s510_s20 = int_to_ptr.vmem [resolvable:$true] %s509_s20 }
  0x2f   : > { %p2668_p6 = scmp.ne.s32.totalorder %s499_s21, %s2667_s30  ;;  %s2674_s17 = scalar_lea.vmem %s499_s21, 32 }
  0x30   : > { %p2658_p4 = pneg %p3065_p2  ;;  %p2675_p11 = scmp.lt.s32.totalorder %s499_s21, %s499_s21 }
  0x31   : > { %p2676_p13 = scmp.lt.s32.totalorder %s2674_s17, %s2667_s30 }
  0x32   : > { %p2670_p5 = pnand %p2668_p6, %p2658_p4 }
  0x33   : > { %p2677_p9 = por %p2676_p13, %p2675_p11 }
  0x34   : > { %p2671_p10 = pneg %p2670_p5 }
  0x36   : > { %p2678_p8 = pnand %p2677_p9, %p2671_p10 }
  0x38   : > { %2681 = shalt.err (!%p2678_p8)
}
  0x39   : > { %s3531_s2 = sld [smem:[#allocation29_spill]]  ;;  %s2693_s14 = scalar_lea.vmem %s510_s20, 16 }
  0x3a   : > { %p2694_p0 = scmp.ne.s32.totalorder %s510_s20, %s2693_s14  ;;  %s2700_s13 = scalar_lea.vmem %s510_s20, 32 }
  0x3b   : > { %p2701_p5 = scmp.lt.s32.totalorder %s510_s20, %s510_s20  ;;  %p2702_p7 = scmp.lt.s32.totalorder %s2700_s13, %s2693_s14 }
  0x3c   : > { %p2696_p3 = pnand %p2694_p0, %p2658_p4 }
  0x3d   : > { %p2703_p12 = por %p2702_p7, %p2701_p5 }
  0x3e   : > { %p2697_p6 = pneg %p2696_p3 }
  0x3f   : > { %2523 = dma.hbm_to_vmem [thread:$0]  (!%p3065_p2), %s3531_s2, 16, %s499_s21, [#allocation6]  }
  0x40   : > { %p2704_p11 = pnand %p2703_p12, %p2697_p6 }
  0x42   : > { %2707 = shalt.err (!%p2704_p11)
}
  0x43   : > { %s3532_s3 = sld [smem:[#allocation30_spill]]  ;;  %s45_s15 = sadd.s32 1, %s2864_s26 }
  0x44   : > { %s48_s21 = sadd.s32 1, %s2868_s27  ;;  %p46_p3 = scmp.ge.s32.totalorder %s45_s15, 2 }
  0x45   : > { %s3090_s13 = sand.u32 1, %s2852_s23   ;;  %s2363_s25 = sshll.u32 %s2868_s27, 8 }
  0x46   : > { %s2305_s14 = sshll.u32 %s3090_s13, 4  ;;  %s3586_s15 = smov (%p46_p3, %s45_s15), 0 }
  0x47   : > { %3533 = sst [smem:[#allocation24_spill]] %s3586_s15  ;;  %s3588_s21 = smov (!%p46_p3, %s48_s21), %s2868_s27 }
  0x48   : > { %p50_p7 = scmp.ge.s32.totalorder %s3588_s21, 2  ;;  %s3534_s17 = sld [smem:[#allocation27_spill]] }
  0x49   : > { %2526 = dma.hbm_to_vmem [thread:$0]  (!%p3065_p2), %s3532_s3, 16, %s510_s20, [#allocation9]  }
  0x4a   : > { %s524_s2 = scalar_lea.vmem [#allocation2], %s2305_s14  ;;  %s3590_s21 = smov (%p50_p7, %s3588_s21), 0 }
  0x4b   : > { %s531_s3 = sshll.u32 %s524_s2, 4  ;;  %3535 = sst [smem:[#allocation25_spill]] %s3590_s21  ;;  %s532_s3 = int_to_ptr.vmem [resolvable:$true] %s531_s3 }
  0x4c   : > { %s52_s26 = ssub.s32 %s2868_s27, %s3590_s21  ;;  %s541_s12 = sand.u32 1, %s2872_s28  }
  0x4d   : > { %p3107_p8 = scmp.eq.s32.totalorder %s52_s26, 0  ;;  %s521_s15 = scalar_lea.sflag [#allocation3], %s3090_s13 }
  0x4e   : > { %s3100_s20 = scalar_lea.hbm %s3534_s17, %s2363_s25  ;;  %p2710_p9 = pneg %p3059_p1 }
  0x4f   : > { %s2721_s10 = scalar_lea.vmem %s532_s3, 256  ;;  %s2876_s2 = smov [#allocation2]  }
  0x50   : > { %p2722_p12 = scmp.ne.s32.totalorder %s532_s3, %s2721_s10  ;;  %s2726_s14 = sshll.u32 %s2876_s2, 4  ;;  %s2727_s14 = int_to_ptr.vmem [resolvable:$false] %s2726_s14 }
  0x51   : > { %s2728_s25 = scalar_lea.vmem %s2727_s14, 512  ;;  %p2729_p10 = scmp.lt.s32.totalorder %s532_s3, %s2727_s14 }
  0x52   : > { %p2724_p2 = pnand %p2722_p12, %p2710_p9  ;;  %p2730_p13 = scmp.lt.s32.totalorder %s2728_s25, %s2721_s10 }
  0x54   : > { %p2725_p4 = pneg %p2724_p2  ;;  %p2731_p0 = por %p2730_p13, %p2729_p10 }
  0x56   : > { %p2732_p6 = pnand %p2731_p0, %p2725_p4 }
  0x58   : > { %2735 = shalt.err (!%p2732_p6)
}
  0x59   : > { %s2877_s26 = smov 128   ;;  %s2878_s19 = smov 8  }
  0x5a   : > { %2530 = dma.hbm_to_vmem [thread:$0]  (!%p3059_p1), %s3100_s20, 256, %s532_s3, %s521_s15, %s2877_s26, %s2877_s26, %s2878_s19  }
  0x5b   : > { %s3537_s30 = sadd.s32 1, %s2852_s23  ;;  %s2308_s10 = sshll.u32 %s3090_s13, 1 }
  0x5c   : > { %s3125_s17 = scalar_select %p3107_p8, %s2852_s23, %s3537_s30  }
  0x5d   : > { %s2364_s2 = sshll.u32 %s2868_s27, 5  ;;  %s3539_s1 = sld [smem:[#allocation28_spill]] }
  0x5e   : > { %3538 = sst [smem:[#allocation26_spill]] %s3125_s17  ;;  %s545_s28 = scalar_lea.vmem [#allocation5], %s2308_s10 }
  0x5f   : > { %s552_s9 = sshll.u32 %s545_s28, 4  ;;  %s542_s8 = scalar_lea.sflag [#allocation6], %s541_s12  ;;  %s553_s9 = int_to_ptr.vmem [resolvable:$true] %s552_s9 }
  0x60   : > { %s2749_s7 = scalar_lea.vmem %s553_s9, 32  ;;  %s2879_s3 = smov [#allocation5]  }
  0x61   : > { %p2750_p5 = scmp.ne.s32.totalorder %s553_s9, %s2749_s7  ;;  %s2754_s11 = sshll.u32 %s2879_s3, 4  ;;  %s2755_s11 = int_to_ptr.vmem [resolvable:$false] %s2754_s11 }
  0x62   : > { %s2756_s15 = scalar_lea.vmem %s2755_s11, 64  ;;  %p2757_p7 = scmp.lt.s32.totalorder %s553_s9, %s2755_s11 }
  0x63   : > { %s551_s21 = scalar_lea.hbm %s3539_s1, %s2364_s2  ;;  %p2752_p11 = pnand %p2750_p5, %p2710_p9 }
  0x64   : > { %p2758_p8 = scmp.lt.s32.totalorder %s2756_s15, %s2749_s7 }
  0x65   : > { %p2753_p3 = pneg %p2752_p11 }
  0x66   : > { %p2759_p12 = por %p2758_p8, %p2757_p7 }
  0x68   : > { %p2760_p2 = pnand %p2759_p12, %p2753_p3 }
  0x6a   : > { %2763 = shalt.err (!%p2760_p2)
}
  0x6b   : > { %s2880_s13 = smov 16   ;;  %s2881_s28 = smov 1  }
  0x6c   : > { %2533 = dma.hbm_to_vmem [thread:$0]  (!%p3059_p1), %s551_s21, 32, %s553_s9, %s542_s8, %s2880_s13, %s2880_s13, %s2881_s28  }
  0x6d   : > { %p3540_p4 = scmp.ne.s32.totalorder %s3528_s0, 0 }
  0x6e   : > { %s3140_s12 = sand.u32 (!%p3540_p4), 1, %s2848_s22   ;;  %p3541_p9 = scmp.ne.s32.totalorder (!%p3540_p4), %s3523_s18, 0 }
  0x6f   : > { %644 = sbr.rel (%p3540_p4) target bundleno = 3365 (0xd25), region = 84  ;;  %s3497_s20 = sshll.u32 (!%p3540_p4), %s3140_s12, 4 }
  0x70   : > { %s647_s7 = scalar_lea.sflag (!%p3540_p4), [#allocation3], %s3140_s12  ;;  %s3146_s26 = scalar_lea.vmem (!%p3540_p4), [#allocation2], %s3497_s20 }
  0x74   : > { %2823 = dma.done.wait (%p3541_p9), %s647_s7, 256  }
  0x75   : > { %2825 = vsyncadd (%p3541_p9), %s647_s7, 4294967040  ;;  %s655_s8 = sand.u32 1, %s3019_s29   ;;  %s2313_s9 = sshll.u32 %s3140_s12, 1 }
  0x76   : > { %s656_s16 = scalar_lea.sflag [#allocation6], %s655_s8  ;;  %s3154_s0 = scalar_lea.vmem [#allocation5], %s2313_s9 }
  0x77   : > { %2827 = dma.done.wait (%p3541_p9), %s656_s16, 32  }
  0x78   : > { %2829 = vsyncadd (%p3541_p9), %s656_s16, 4294967264  ;;  %p3542_p1 = scmp.eq.s32.totalorder %s3019_s29, 0 }
  0x7a   : > { %2831 = dma.done.wait (%p3542_p1), [#allocation6], 16   ;;  %p3543_p10 = pmov %p3542_p1 }
  0x7b   : > { %p3544_p13 = pmov %p3542_p1 }
  0x7c   : > { %2833 = vsyncadd (%p3543_p10), [#allocation6], 4294967280 }
  0x7d   : > { %2835 = dma.done.wait (%p3544_p13), [#allocation9], 16   ;;  %p3545_p0 = pmov %p3542_p1 }
  0x7e   : > { %p767_p6 = scmp.lt.s32.totalorder %s2856_s24, 1  ;;  %s3546_s4 = sld [smem:[#allocation31_spill]] }
  0x7f   : > { %2837 = vsyncadd (%p3545_p0), [#allocation9], 4294967280  ;;  %s3547_s6 = sld [smem:[#allocation32_spill]]  ;;  %s3557_s25 = sshll.u32 %s3140_s12, 4 }
  0x80   : > { %s3170_s21 = scalar_select %p767_p6, %s2856_s24, 1 }
  0x81   : > { %s3553_s28 = sld [smem:[#allocation38_spill]]  ;;  %p2325_p5 = scmp.ne.s32.totalorder %s2856_s24, 0 }
  0x82   : > { %s2365_s18 = sshll.u32 %s3170_s21, 5  ;;  %s2368_s23 = sshll.u32 %s3170_s21, 6 }
  0x83   : > { %s3554_s16 = sld [smem:[#allocation39_spill]] }
  0x84   : > { %s3180_s14 = scalar_lea.vmem %s3546_s4, %s2365_s18  ;;  %s3551_s4 = sld [smem:[#allocation36_spill]] }
  0x85   : > { %s3185_s11 = scalar_lea.vmem %s3547_s6, %s2365_s18  ;;  %s3552_s6 = sld [smem:[#allocation37_spill]] }
  0x86   : > { %s3555_s1 = sld [smem:[#allocation40_spill]] }
  0x87   : > { %s3212_s7 = scalar_lea.vmem %s3553_s28, %s2368_s23  ;;  %s3556_s2 = sld [smem:[#allocation41_spill]] }
  0x89   : > { %s804_s19 = scalar_lea.vmem %s3554_s16, %s3170_s21  ;;  %815 = sbr.rel (%p2325_p5) target bundleno = 456 (0x1c8), region = 104 }
  0x8a   : > { %s3202_s27 = scalar_lea.vmem %s3551_s4, %s2365_s18 }
  0x8b   : > { %s796_s17 = scalar_lea.vmem %s3552_s6, %s3170_s21  ;;  %s3228_s6 = scalar_lea.vmem [#allocation10], %s3557_s25 }
  0x8c   : > { %s807_s10 = scalar_lea.vmem %s3555_s1, %s3170_s21 }
  0x8d   : > { %s810_s20 = scalar_lea.vmem %s3556_s2, %s3170_s21 }
  0x8e   : > { %v816_v0 = vld [vmem:[%s3146_s26] sm:$0xff]  ;;  %vm820_vm0 = vcmask 261120   ;;  %v817_v1 = vld [vmem:[%s3146_s26 + $0x8] sm:$0xff] }
  0x8f   : > { %v821_v2 = vsel %vm820_vm0, %v816_v0, 0.0  ;;  %v824_v3 = vsel %vm820_vm0, %v817_v1, 0.0  ;;  %v2326_v21 = vld [vmem:[#allocation7] ss:$0 sm:$0xff]  ;;  %v2327_v23 = vld [vmem:[#allocation8] ss:$0 sm:$0xff] }
  0x90   : > { %822 = vadd.xlane.f32.xlu0 %v821_v2 }
  0x94   : > { %825 = vadd.xlane.f32.xlu0 %v824_v3 }
 0x119   : > { %v823_v4 = vpop.xlane.xlu0 %822 }
 0x11a   : > { %v828_v5 = vmul.f32 0.03125, %v823_v4 }
 0x11c   : > { %v830_v6 = vsub.f32 %v816_v0, %v828_v5 }
 0x11d   : > { %v826_v7 = vpop.xlane.xlu0 %825 }
 0x11e   : > { %v829_v8 = vmul.f32 0.03125, %v826_v7  ;;  %v832_v9 = vmul.f32 %v830_v6, %v830_v6 }
 0x120   : > { %v831_v10 = vsub.f32 %v817_v1, %v829_v8  ;;  %v834_v11 = vsel %vm820_vm0, %v832_v9, 0.0 }
 0x121   : > { %835 = vadd.xlane.f32.xlu1 %v834_v11 }
 0x122   : > { %v833_v12 = vmul.f32 %v831_v10, %v831_v10 }
 0x124   : > { %v837_v13 = vsel %vm820_vm0, %v833_v12, 0.0 }
 0x125   : > { %838 = vadd.xlane.f32.xlu1 %v837_v13 }
 0x1aa   : > { %v836_v14 = vpop.xlane.xlu1 %835 }
 0x1ab   : > { %v840_v15 = vmul.f32 0.03125, %v836_v14 }
 0x1ad   : > { %v842_v16 = vadd.f32 1e-05, %v840_v15 }
 0x1ae   : > { %v839_v17 = vpop.xlane.xlu1 %838 }
 0x1af   : > { %2624 = vrsqrt.f32 %v842_v16  ;;  %v841_v18 = vmul.f32 0.03125, %v839_v17 }
 0x1b1   : > { %v843_v19 = vadd.f32 1e-05, %v841_v18 }
 0x1b3   : > { %2626 = vrsqrt.f32 %v843_v19 }
 0x1bc   : > { %v2625_v20 = vpop.eup %2624 }
 0x1bd   : > { %v846_v22 = vmul.f32 %v2625_v20, %v830_v6 }
 0x1bf   : > { %v854_v24 = vmul.f32 %v2326_v21, %v846_v22 }
 0x1c0   : > { %v2627_v25 = vpop.eup %2626 }
 0x1c1   : > { %v862_v26 = vadd.f32 %v2327_v23, %v854_v24  ;;  %v847_v27 = vmul.f32 %v2627_v25, %v831_v10 }
 0x1c3   : > { %864 = vst.msk [vmem:[%s3228_s6] sm:$0xff] %vm820_vm0, %v862_v26  ;;  %v855_v28 = vmul.f32 %v2326_v21, %v847_v27 }
 0x1c5   : > { %v863_v29 = vadd.f32 %v2327_v23, %v855_v28 }
 0x1c7   : > { %865 = vst.msk [vmem:[%s3228_s6 + $0x8] sm:$0xff] %vm820_vm0, %v863_v29 }
 0x1c8 PF: > { %v871_v30 = vld [vmem:[%s3180_s14 + $0x18] sm:$0xff]  ;;  %v870_v31 = vld [vmem:[%s3180_s14 + $0x10] sm:$0xff]  ;;  %vm879_vm1 = vcmask 261120   ;;  %v869_v33 = vld [vmem:[%s3180_s14 + $0x8] sm:$0xff]  ;;  %v2882_v36 = vmov 0.0   ;;  %vm2883_vm2 = vmmov 0   ;;  %s3558_s24 = scalar_lea.vmem %s3472_s5, %s3170_s21 }
 0x1c9   : > { %2414 = vmatprep.subr.mxu1 %v871_v30  ;;  %v868_v34 = vld [vmem:[%s3180_s14] sm:$0xff]  ;;  %2435 = vmatprep.subr.mxu0 %v2882_v36  ;;  %s2884_s26 = smov 96   ;;  %vm966_vm3 = vcmask 130048   ;;  %vm1134_vm4 = vcmask 64512   ;;  %s2885_s14 = smov 64   ;;  %vm1909_vm5 = vcmask 523264  }
 0x1ca   : > { %v3244_v32 = vld [vmem:[%s3228_s6] sm:$0xff]  ;;  %2415 = vmatpush3.msra.mxu1 %v871_v30  ;;  %2437 = vmatprep.mubr.msk.f32.mxu0 %vm2883_vm2, %v2882_v36  ;;  %v2328_v38 = vld [vmem:[%s3558_s24] ss:$0 sm:$0xff]  ;;  %v3289_v50 = vld [vmem:[%s3154_s0 + $0x1] ss:$0 sm:$0xff]  ;;  %s2886_s3 = smov 80  }
 0x1cb   : > { %2422 = vmatprep.mubr.msk.f32.mxu1 %vm879_vm1, %v3244_v32  ;;  %2416 = vmatprep.subr.mxu1 %v870_v31  ;;  %v3285_v45 = vld [vmem:[%s3154_s0] ss:$0 sm:$0xff]  ;;  %s2887_s0 = smov 112   ;;  %s2888_s15 = smov 48  }
 0x1cc   : > { %2417 = vmatpush3.msra.mxu1 %v870_v31  ;;  %s2889_s13 = smov 16   ;;  %s3559_s8 = sld [smem:[#allocation33_spill]] }
 0x1cd   : > { %2418 = vmatprep.subr.mxu1 %v869_v33  ;;  %s3561_s29 = sld [smem:[#allocation34_spill]] }
 0x1ce   : > { %2419 = vmatpush3.msra.mxu1 %v869_v33  ;;  %v3251_v35 = vld [vmem:[%s3228_s6 + $0x8] sm:$0xff]  ;;  %s3563_s2 = sld [smem:[#allocation35_spill]] }
 0x1cf   : > { %2420 = vmatprep.subr.mxu1 %v868_v34  ;;  %s3570_s28 = sld [smem:[#allocation22_spill]] }
 0x1d0   : > { %2421 = vmatpush3.msra.mxu1 %v868_v34 }
 0x1d1   : > { %2423 = vmatmul.mubr.msk.f32.vlgmr.msra.gmra.mxu1 %vm879_vm1, %v3251_v35  ;;  %2425 = vmatprep.subr.mxu1 %v2882_v36 }
 0x1d2   : > { %2427 = vmatprep.mubr.msk.f32.mxu1 %vm2883_vm2, %v2882_v36  ;;  %s3560_s9 = scalar_lea.vmem %s3559_s8, %s3170_s21 }
 0x1d3   : > { %s3562_s4 = scalar_lea.vmem %s3561_s29, %s3170_s21  ;;  %s3571_s29 = sld [smem:[#allocation42_spill]] }
 0x1d4   : > { %s3564_s25 = scalar_lea.vmem %s3563_s2, %s3170_s21 }
 0x1d5   : > { %p3572_p3 = scmp.ne.s32.totalorder %s3570_s28, 0 }
 0x291   : > { %v2424_v37 = vpop.f32.mrf.mxu1 }
 0x292   : > { %v3269_v41 = vadd.f32 %v2424_v37, %v2328_v38 }
 0x293   : > { %v952_v39 = vpop.f32.mrf.mxu1 }
 0x294   : > { %v3266_v40 = vadd.f32 %v2328_v38, %v952_v39 }
 0x296   : > { %964 = vrot.lane.b32.xlu0 %v3266_v40, %s2884_s26 }
 0x29a   : > { %1042 = vrot.lane.b32.xlu0 %v3269_v41, %s2884_s26 }
 0x308   : > { %v965_v42 = vpop.permute.xlu0 %964 }
 0x309   : > { %2426 = vmatpush3.xpose.msk.msra.mxu1 %vm966_vm3, %v965_v42 }
 0x30a   : > { %2430 = vmatprep.subr.mxu1 %v2882_v36 }
 0x30c   : > { %2428 = vmatmul.mubr.msk.f32.vlgmr.msra.gmra.mxu1 %vm966_vm3, %v3266_v40  ;;  %v1043_v43 = vpop.permute.xlu0 %1042 }
 0x30d   : > { %2431 = vmatpush3.xpose.msk.msra.mxu1 %vm966_vm3, %v1043_v43  ;;  %2432 = vmatprep.mubr.msk.f32.mxu1 %vm2883_vm2, %v2882_v36 }
 0x30e   : > { %2440 = vmatprep.subr.mxu1 %v2882_v36 }
 0x310   : > { %2433 = vmatmul.mubr.msk.f32.vlgmr.msra.gmra.mxu1 %vm966_vm3, %v3269_v41 }
 0x311   : > { %2442 = vmatprep.mubr.msk.f32.mxu1 %vm2883_vm2, %v2882_v36 }
 0x3cc   : > { %v1037_v44 = vpop.f32.mrf.mxu1 }
 0x3cd   : > { %v1118_v46 = vmul.f32 0.25, %v1037_v44 }
 0x3ce   : > { %v2429_v47 = vpop.f32.mrf.mxu1 }
 0x3cf   : > { %v1132_v48 = vadd.f32 %v3285_v45, %v1118_v46 }
 0x3d0   : > { %v1114_v49 = vpop.f32.mrf.mxu1 }
 0x3d1   : > { %v1119_v51 = vmul.f32 0.25, %v1114_v49  ;;  %v1135_v52 = vsel %vm1134_vm4, %v1132_v48, -inf  ;;  %v1656_v49 = vld [vmem:[%s3185_s11 + $0x18] sm:$0xff] }
 0x3d2   : > { %1136 = vmax.xlane.f32.xlu1 %v1135_v52  ;;  %v2434_v53 = vpop.f32.mrf.mxu1 }
 0x3d3   : > { %v1133_v54 = vadd.f32 %v3289_v50, %v1119_v51  ;;  %v1653_v51 = vld [vmem:[%s3185_s11] sm:$0xff] }
 0x3d5   : > { %v1138_v55 = vsel %vm1134_vm4, %v1133_v54, -inf }
 0x3d6   : > { %1139 = vmax.xlane.f32.xlu1 %v1138_v55 }
 0x3e7   : > { %1157 = vrot.lane.b32.xlu1 %v3266_v40, %s2885_s14 }
 0x3eb   : > { %1233 = vrot.lane.b32.xlu1 %v3269_v41, %s2885_s14 }
 0x3ef   : > { %1311 = vrot.lane.b32.xlu1 %v3266_v40, %s2886_s3 }
 0x3f3   : > { %1389 = vrot.lane.b32.xlu1 %v3269_v41, %s2886_s3 }
 0x45b   : > { %v1137_v56 = vpop.xlane.xlu1 %1136 }
 0x45c   : > { %v1141_v57 = vsub.f32 %v1132_v48, %v1137_v56 }
 0x45e   : > { %v1143_v58 = vmul.f32 1.442695, %v1141_v57 }
 0x45f   : > { %v1140_v59 = vpop.xlane.xlu1 %1139 }
 0x460   : > { %2628 = vpow2.f32 %v1143_v58  ;;  %v1142_v60 = vsub.f32 %v1133_v54, %v1140_v59 }
 0x462   : > { %v1145_v61 = vmul.f32 1.442695, %v1142_v60  ;;  %v2345_v60 = vld [vmem:[%s3560_s9] ss:$0 sm:$0xff]  ;;  %s2053_s9 = sshll.u32 %s3228_s6, 4  ;;  %s3410_s9 = int_to_ptr.vmem [resolvable:$true] %s2053_s9 }
 0x463   : > { %v1158_v62 = vpop.permute.xlu1 %1157  ;;  %s2764_s21 = scalar_lea.vmem %s3410_s9, 256 }
 0x464   : > { %2630 = vpow2.f32 %v1145_v61  ;;  %2436 = vmatpush3.msra.mxu0 %v1158_v62  ;;  %p2765_p11 = scmp.ne.s32.totalorder %s3410_s9, %s2764_s21 }
 0x465   : > { %2445 = vmatprep.subr.mxu0 %v2882_v36 }
 0x466   : > { %p2766_p7 = pnand %p2765_p11, %p3572_p3 }
 0x467   : > { %v1234_v63 = vpop.permute.xlu1 %1233 }
 0x468   : > { %2441 = vmatpush3.msra.mxu1 %v1234_v63  ;;  %p2767_p8 = pneg %p2766_p7 }
 0x469   : > { %2450 = vmatprep.subr.mxu1 %v2882_v36 }
 0x46b   : > { %v1312_v4 = vpop.permute.xlu1 %1311 }
 0x46d   : > { %v2629_v0 = vpop.eup %2628 }
 0x46e   : > { %v1147_v1 = vsel %vm1134_vm4, %v2629_v0, 0.0 }
 0x46f   : > { %1148 = vadd.xlane.f32.xlu0 %v1147_v1  ;;  %v1390_v5 = vpop.permute.xlu1 %1389 }
 0x471   : > { %v2631_v2 = vpop.eup %2630 }
 0x472   : > { %v1150_v3 = vsel %vm1134_vm4, %v2631_v2, 0.0 }
 0x473   : > { %1151 = vadd.xlane.f32.xlu1 %v1150_v3 }
 0x484   : > { %1387 = vrot.lane.b32.xlu1 %v3269_v41, %s2887_s0 }
 0x485   : > { %1309 = vrot.lane.b32.xlu0 %v3266_v40, %s2887_s0 }
 0x4f8   : > { %v1149_v6 = vpop.xlane.xlu0 %1148 }
 0x4f9   : > { %2632 = vrcp.f32 %v1149_v6 }
 0x4fc   : > { %v1152_v7 = vpop.xlane.xlu1 %1151  ;;  %v1310_v12 = vpop.permute.xlu0 %1309 }
 0x4fd   : > { %2634 = vrcp.f32 %v1152_v7 }
 0x500   : > { %v1388_v13 = vpop.permute.xlu1 %1387 }
 0x506   : > { %v2633_v8 = vpop.eup %2632 }
 0x507   : > { %v1155_v9 = vmul.f32 %v2633_v8, %v2629_v0 }
 0x509   : > { %2438 = vmatmul.mubr.msk.f32.vlgmr.msra.gmra.mxu0 %vm1134_vm4, %v1155_v9 }
 0x50a   : > { %v2635_v10 = vpop.eup %2634  ;;  %2446 = vmatpush3.xpose.msk.msra.mxu0 %vm966_vm3, %v1312_v4  ;;  %2447 = vmatprep.mubr.msk.f32.mxu0 %vm2883_vm2, %v2882_v36 }
 0x50b   : > { %v1156_v11 = vmul.f32 %v2635_v10, %v2631_v2  ;;  %2455 = vmatprep.subr.mxu0 %v2882_v36 }
 0x50d   : > { %2443 = vmatmul.mubr.msk.f32.vlgmr.msra.gmra.mxu1 %vm1134_vm4, %v1156_v11  ;;  %2448 = vmatmul.mubr.msk.f32.vlgmr.msra.gmra.mxu0 %vm966_vm3, %v1310_v12 }
 0x50e   : > { %2451 = vmatpush3.xpose.msk.msra.mxu1 %vm966_vm3, %v1390_v5  ;;  %2452 = vmatprep.mubr.msk.f32.mxu1 %vm2883_vm2, %v2882_v36 }
 0x50f   : > { %2460 = vmatprep.subr.mxu1 %v2882_v36  ;;  %2457 = vmatprep.mubr.msk.f32.mxu0 %vm2883_vm2, %v2882_v36 }
 0x511   : > { %2453 = vmatmul.mubr.msk.f32.vlgmr.msra.gmra.mxu1 %vm966_vm3, %v1388_v13  ;;  %v1795_v13 = vld [vmem:[%s3202_s27 + $0x18] sm:$0xff] }
 0x512   : > { %2462 = vmatprep.mubr.msk.f32.mxu1 %vm2883_vm2, %v2882_v36 }
 0x5c9   : > { %v3320_v14 = vpop.f32.mrf.mxu0 }
 0x5cb   : > { %v2439_v15 = vpop.f32.mrf.mxu0 }
 0x5cc   : > { %v1793_v15 = vld [vmem:[%s3202_s27 + $0x8] sm:$0xff] }
 0x5cd   : > { %v3322_v16 = vpop.f32.mrf.mxu1  ;;  %v1383_v17 = vpop.f32.mrf.mxu0 }
 0x5ce   : > { %v1465_v18 = vmul.f32 0.25, %v1383_v17 }
 0x5cf   : > { %v2444_v19 = vpop.f32.mrf.mxu1  ;;  %v2449_v20 = vpop.f32.mrf.mxu0 }
 0x5d0   : > { %v1467_v21 = vadd.f32 %v3285_v45, %v1465_v18 }
 0x5d1   : > { %v1461_v22 = vpop.f32.mrf.mxu1 }
 0x5d2   : > { %v1466_v23 = vmul.f32 0.25, %v1461_v22  ;;  %v1469_v24 = vsel %vm1134_vm4, %v1467_v21, -inf }
 0x5d3   : > { %v2454_v25 = vpop.f32.mrf.mxu1  ;;  %1470 = vmax.xlane.f32.xlu1 %v1469_v24  ;;  %v2348_v24 = vld [vmem:[%s3562_s4] ss:$0 sm:$0xff] }
 0x5d4   : > { %v1468_v26 = vadd.f32 %v3289_v50, %v1466_v23  ;;  %v1655_v50 = vld [vmem:[%s3185_s11 + $0x10] sm:$0xff] }
 0x5d6   : > { %v1472_v27 = vsel %vm1134_vm4, %v1468_v26, -inf }
 0x5d7   : > { %1473 = vmax.xlane.f32.xlu0 %v1472_v27 }
 0x5ed   : > { %1567 = vrot.lane.b32.xlu0 %v3269_v41, %s2888_s15 }
 0x65c   : > { %v1471_v28 = vpop.xlane.xlu1 %1470 }
 0x65d   : > { %v1475_v29 = vsub.f32 %v1467_v21, %v1471_v28 }
 0x65f   : > { %v1477_v30 = vmul.f32 1.442695, %v1475_v29 }
 0x660   : > { %v1474_v31 = vpop.xlane.xlu0 %1473 }
 0x661   : > { %2636 = vpow2.f32 %v1477_v30  ;;  %v1476_v33 = vsub.f32 %v1468_v26, %v1474_v31  ;;  %v2349_v26 = vld [vmem:[%s3564_s25] ss:$0 sm:$0xff] }
 0x663   : > { %v1479_v34 = vmul.f32 1.442695, %v1476_v33 }
 0x664   : > { %v1568_v36 = vpop.permute.xlu0 %1567 }
 0x665   : > { %2638 = vpow2.f32 %v1479_v34  ;;  %2461 = vmatpush3.msra.mxu1 %v1568_v36  ;;  %v1901_v34 = vld [vmem:[%s3212_s7 + $0x38] sm:$0xff]  ;;  %v1900_v36 = vld [vmem:[%s3212_s7 + $0x30] sm:$0xff] }
 0x666   : > { %2476 = vmatprep.subr.mxu1 %v1795_v13 }
 0x66e   : > { %v2637_v37 = vpop.eup %2636 }
 0x66f   : > { %v1481_v38 = vsel %vm1134_vm4, %v2637_v37, 0.0 }
 0x670   : > { %1482 = vadd.xlane.f32.xlu1 %v1481_v38  ;;  %v1898_v38 = vld [vmem:[%s3212_s7 + $0x20] sm:$0xff] }
 0x672   : > { %v2639_v39 = vpop.eup %2638 }
 0x673   : > { %v1484_v42 = vsel %vm1134_vm4, %v2639_v39, 0.0 }
 0x674   : > { %1485 = vadd.xlane.f32.xlu1 %v1484_v42  ;;  %v1896_v42 = vld [vmem:[%s3212_s7 + $0x10] sm:$0xff] }
 0x685   : > { %1491 = vrot.lane.b32.xlu1 %v3266_v40, %s2888_s15  ;;  %v1654_v40 = vld [vmem:[%s3185_s11 + $0x8] sm:$0xff] }
 0x6f9   : > { %v1483_v41 = vpop.xlane.xlu1 %1482 }
 0x6fa   : > { %2640 = vrcp.f32 %v1483_v41  ;;  %v1895_v41 = vld [vmem:[%s3212_s7 + $0x8] sm:$0xff] }
 0x6fd   : > { %v1486_v43 = vpop.xlane.xlu1 %1485 }
 0x6fe   : > { %2642 = vrcp.f32 %v1486_v43  ;;  %v1894_v43 = vld [vmem:[%s3212_s7] sm:$0xff] }
 0x701   : > { %v1492_v44 = vpop.permute.xlu1 %1491 }
 0x702   : > { %2456 = vmatpush3.msra.mxu0 %v1492_v44  ;;  %v2350_v44 = vld [vmem:[%s796_s17] ss:$0 sm:$0xff] }
 0x703   : > { %2465 = vmatprep.subr.mxu0 %v1656_v49 }
 0x707   : > { %v2641_v45 = vpop.eup %2640 }
 0x708   : > { %v1489_v46 = vmul.f32 %v2641_v45, %v2637_v37  ;;  %v1899_v37 = vld [vmem:[%s3212_s7 + $0x28] sm:$0xff] }
 0x70a   : > { %2458 = vmatmul.mubr.msk.f32.vlgmr.msra.gmra.mxu0 %vm1134_vm4, %v1489_v46 }
 0x70b   : > { %v2643_v47 = vpop.eup %2642  ;;  %2466 = vmatpush3.msra.mxu0 %v1656_v49 }
 0x70c   : > { %v1490_v48 = vmul.f32 %v2643_v47, %v2639_v39  ;;  %2467 = vmatprep.subr.mxu0 %v1655_v50  ;;  %v1897_v39 = vld [vmem:[%s3212_s7 + $0x18] sm:$0xff] }
 0x70d   : > { %2468 = vmatpush3.msra.mxu0 %v1655_v50 }
 0x70e   : > { %2463 = vmatmul.mubr.msk.f32.vlgmr.msra.gmra.mxu1 %vm1134_vm4, %v1490_v48  ;;  %2469 = vmatprep.subr.mxu0 %v1654_v40 }
 0x70f   : > { %2470 = vmatpush3.msra.mxu0 %v1654_v40  ;;  %2477 = vmatpush3.msra.mxu1 %v1795_v13 }
 0x710   : > { %2471 = vmatprep.subr.mxu0 %v1653_v51 }
 0x711   : > { %2472 = vmatpush3.msra.mxu0 %v1653_v51 }
 0x712   : > { %2487 = vmatprep.subr.mxu0 %v1901_v34 }
 0x7ca   : > { %v1563_v52 = vpop.f32.mrf.mxu0 }
 0x7cb   : > { %1645 = vrot.lane.b32.xlu1 %v1563_v52, %s2889_s13 }
 0x7cc   : > { %v2459_v53 = vpop.f32.mrf.mxu0 }
 0x7ce   : > { %v1639_v54 = vpop.f32.mrf.mxu1 }
 0x7cf   : > { %1647 = vrot.lane.b32.xlu1 %v1639_v54, %s2889_s13 }
 0x7d0   : > { %v2464_v55 = vpop.f32.mrf.mxu1 }
 0x83d   : > { %v1646_v56 = vpop.permute.xlu1 %1645 }
 0x83e   : > { %v1651_v57 = vsel %vm966_vm3, %v3320_v14, %v1646_v56  ;;  %v1794_v14 = vld [vmem:[%s3202_s27 + $0x10] sm:$0xff] }
 0x83f   : > { %2473 = vmatprep.mubr.msk.f32.mxu0 %vm879_vm1, %v1651_v57  ;;  %2478 = vmatprep.subr.mxu1 %v1794_v14 }
 0x840   : > { %2479 = vmatpush3.msra.mxu1 %v1794_v14 }
 0x841   : > { %v1648_v58 = vpop.permute.xlu1 %1647  ;;  %2480 = vmatprep.subr.mxu1 %v1793_v15 }
 0x842   : > { %v1652_v59 = vsel %vm966_vm3, %v3322_v16, %v1648_v58  ;;  %2481 = vmatpush3.msra.mxu1 %v1793_v15  ;;  %v1792_v16 = vld [vmem:[%s3202_s27] sm:$0xff] }
 0x843   : > { %2474 = vmatmul.mubr.msk.f32.vlgmr.msra.gmra.mxu0 %vm879_vm1, %v1652_v59  ;;  %2482 = vmatprep.subr.mxu1 %v1792_v16  ;;  %v2353_v58 = vld [vmem:[%s804_s19] ss:$0 sm:$0xff]  ;;  %s3567_s19 = sld [smem:[#allocation18_spill]] }
 0x844   : > { %2483 = vmatpush3.msra.mxu1 %v1792_v16  ;;  %2488 = vmatpush3.msra.mxu0 %v1901_v34 }
 0x845   : > { %2489 = vmatprep.subr.mxu0 %v1900_v36 }
 0x846   : > { %2490 = vmatpush3.msra.mxu0 %v1900_v36 }
 0x847   : > { %2491 = vmatprep.subr.mxu0 %v1899_v37 }
 0x848   : > { %2492 = vmatpush3.msra.mxu0 %v1899_v37 }
 0x849   : > { %2493 = vmatprep.subr.mxu0 %v1898_v38  ;;  %s2369_s8 = sshll.u32 %s3567_s19, 8 }
 0x84a   : > { %2494 = vmatpush3.msra.mxu0 %v1898_v38  ;;  %s3408_s4 = scalar_lea.hbm %s3571_s29, %s2369_s8 }
 0x84b   : > { %2495 = vmatprep.subr.mxu0 %v1897_v39 }
 0x84c   : > { %2496 = vmatpush3.msra.mxu0 %v1897_v39 }
 0x84d   : > { %2497 = vmatprep.subr.mxu0 %v1896_v42 }
 0x84e   : > { %2498 = vmatpush3.msra.mxu0 %v1896_v42 }
 0x84f   : > { %2499 = vmatprep.subr.mxu0 %v1895_v41 }
 0x850   : > { %2500 = vmatpush3.msra.mxu0 %v1895_v41 }
 0x851   : > { %2501 = vmatprep.subr.mxu0 %v1894_v43 }
 0x852   : > { %2502 = vmatpush3.msra.mxu0 %v1894_v43 }
 0x903   : > { %v2475_v61 = vpop.f32.mrf.mxu0 }
 0x904   : > { %v1742_v62 = vadd.f32 %v2475_v61, %v2345_v60 }
 0x905   : > { %v1736_v63 = vpop.f32.mrf.mxu0 }
 0x906   : > { %v1737_v0 = vadd.f32 %v2345_v60, %v1736_v63  ;;  %v1746_v1 = vadd.f32 %v1742_v62, %v3251_v35 }
 0x908   : > { %v1752_v2 = vsel %vm879_vm1, %v1746_v1, 0.0  ;;  %v1745_v3 = vadd.f32 %v1737_v0, %v3244_v32 }
 0x909   : > { %1753 = vadd.xlane.f32.xlu1 %v1752_v2 }
 0x90a   : > { %v1749_v4 = vsel %vm879_vm1, %v1745_v3, 0.0 }
 0x90b   : > { %1750 = vadd.xlane.f32.xlu0 %v1749_v4 }
 0x992   : > { %v1754_v5 = vpop.xlane.xlu1 %1753 }
 0x993   : > { %v1757_v6 = vmul.f32 0.03125, %v1754_v5 }
 0x994   : > { %v1751_v7 = vpop.xlane.xlu0 %1750 }
 0x995   : > { %v1756_v8 = vmul.f32 0.03125, %v1751_v7  ;;  %v1759_v9 = vsub.f32 %v1746_v1, %v1757_v6 }
 0x997   : > { %v1758_v10 = vsub.f32 %v1745_v3, %v1756_v8  ;;  %v1761_v12 = vmul.f32 %v1759_v9, %v1759_v9 }
 0x999   : > { %v1760_v11 = vmul.f32 %v1758_v10, %v1758_v10  ;;  %v1765_v32 = vsel %vm879_vm1, %v1761_v12, 0.0 }
 0x99b   : > { %v1762_v35 = vsel %vm879_vm1, %v1760_v11, 0.0 }
 0x99c   : > { %1763 = vadd.xlane.f32.xlu0 %v1762_v35 }
 0x9a0   : > { %1766 = vadd.xlane.f32.xlu0 %v1765_v32 }
 0xa25   : > { %v1764_v17 = vpop.xlane.xlu0 %1763 }
 0xa26   : > { %v1768_v18 = vmul.f32 0.03125, %v1764_v17 }
 0xa28   : > { %v1770_v19 = vadd.f32 1e-05, %v1768_v18  ;;  %v2356_v18 = vld [vmem:[%s807_s10] ss:$0 sm:$0xff]  ;;  %s2890_s10 = smov [#allocation10]  }
 0xa29   : > { %v1767_v20 = vpop.xlane.xlu0 %1766  ;;  %s2768_s27 = sshll.u32 %s2890_s10, 4  ;;  %s2769_s27 = int_to_ptr.vmem [resolvable:$false] %s2768_s27 }
 0xa2a   : > { %2644 = vrsqrt.f32 %v1770_v19  ;;  %v1769_v21 = vmul.f32 0.03125, %v1767_v20  ;;  %s2770_s18 = scalar_lea.vmem %s2769_s27, 512  ;;  %p2771_p12 = scmp.lt.s32.totalorder %s3410_s9, %s2769_s27 }
 0xa2b   : > { %p2772_p2 = scmp.lt.s32.totalorder %s2770_s18, %s2764_s21 }
 0xa2c   : > { %v1771_v22 = vadd.f32 1e-05, %v1769_v21  ;;  %v2357_v21 = vld [vmem:[%s810_s20] ss:$0 sm:$0xff]  ;;  %s2040_s20 = scalar_lea.sflag [#allocation4], %s3140_s12 }
 0xa2d   : > { %p2773_p4 = por %p2772_p2, %p2771_p12 }
 0xa2e   : > { %2646 = vrsqrt.f32 %v1771_v22 }
 0xa2f   : > { %p2774_p9 = pnand %p2773_p4, %p2767_p8 }
 0xa37   : > { %v2645_v23 = vpop.eup %2644 }
 0xa38   : > { %v1774_v25 = vmul.f32 %v2645_v23, %v1758_v10 }
 0xa3a   : > { %v1782_v27 = vmul.f32 %v2348_v24, %v1774_v25 }
 0xa3b   : > { %v2647_v28 = vpop.eup %2646 }
 0xa3c   : > { %v1775_v29 = vmul.f32 %v2647_v28, %v1759_v9  ;;  %v1790_v30 = vadd.f32 %v2349_v26, %v1782_v27 }
 0xa3e   : > { %v1783_v31 = vmul.f32 %v2348_v24, %v1775_v29  ;;  %2484 = vmatprep.mubr.msk.f32.mxu1 %vm879_vm1, %v1790_v30 }
 0xa40   : > { %v1791_v33 = vadd.f32 %v2349_v26, %v1783_v31 }
 0xa42   : > { %2485 = vmatmul.mubr.msk.f32.vlgmr.msra.gmra.mxu1 %vm879_vm1, %v1791_v33 }
 0xb02   : > { %v2486_v45 = vpop.f32.mrf.mxu1 }
 0xb03   : > { %v1881_v46 = vadd.f32 %v2486_v45, %v2350_v44 }
 0xb04   : > { %v1875_v47 = vpop.f32.mrf.mxu1 }
 0xb05   : > { %v1887_v48 = vmul.f32 0.70710677, %v1881_v46  ;;  %v1876_v49 = vadd.f32 %v2350_v44, %v1875_v47  ;;  %v1885_v55 = vmul.f32 0.5, %v1881_v46 }
 0xb07   : > { %2648 = verf.f32 %v1887_v48  ;;  %v1886_v50 = vmul.f32 0.70710677, %v1876_v49  ;;  %v1884_v53 = vmul.f32 0.5, %v1876_v49 }
 0xb09   : > { %2650 = verf.f32 %v1886_v50 }
 0xb14   : > { %v2649_v40 = vpop.eup %2648 }
 0xb15   : > { %v1891_v52 = vadd.f32 1.0, %v2649_v40 }
 0xb16   : > { %v2651_v51 = vpop.eup %2650 }
 0xb17   : > { %v1890_v54 = vadd.f32 1.0, %v2651_v51  ;;  %v1893_v57 = vmul.f32 %v1891_v52, %v1885_v55 }
 0xb19   : > { %v1892_v56 = vmul.f32 %v1890_v54, %v1884_v53 }
 0xb1b   : > { %2503 = vmatprep.mubr.msk.f32.mxu0 %vm1909_vm5, %v1892_v56 }
 0xb1c   : > { %2504 = vmatmul.mubr.msk.f32.vlgmr.msra.gmra.mxu0 %vm1909_vm5, %v1893_v57 }
 0xbdc   : > { %v2505_v59 = vpop.f32.mrf.mxu0 }
 0xbdd   : > { %v1988_v60 = vadd.f32 %v2505_v59, %v2353_v58 }
 0xbde   : > { %v1982_v61 = vpop.f32.mrf.mxu0 }
 0xbdf   : > { %v1983_v62 = vadd.f32 %v2353_v58, %v1982_v61  ;;  %v1992_v63 = vadd.f32 %v1988_v60, %v1791_v33 }
 0xbe1   : > { %v1998_v0 = vsel %vm879_vm1, %v1992_v63, 0.0  ;;  %v1991_v1 = vadd.f32 %v1983_v62, %v1790_v30 }
 0xbe2   : > { %1999 = vadd.xlane.f32.xlu0 %v1998_v0 }
 0xbe3   : > { %v1995_v2 = vsel %vm879_vm1, %v1991_v1, 0.0 }
 0xbe4   : > { %1996 = vadd.xlane.f32.xlu1 %v1995_v2 }
 0xc6b   : > { %v2000_v3 = vpop.xlane.xlu0 %1999 }
 0xc6c   : > { %v2002_v4 = vmul.f32 0.03125, %v2000_v3 }
 0xc6d   : > { %v1997_v5 = vpop.xlane.xlu1 %1996 }
 0xc6e   : > { %v2004_v6 = vsub.f32 %v1992_v63, %v2002_v4  ;;  %v2001_v7 = vmul.f32 0.03125, %v1997_v5 }
 0xc70   : > { %v2003_v8 = vsub.f32 %v1991_v1, %v2001_v7  ;;  %v2006_v9 = vmul.f32 %v2004_v6, %v2004_v6 }
 0xc72   : > { %v2010_v10 = vsel %vm879_vm1, %v2006_v9, 0.0  ;;  %v2005_v11 = vmul.f32 %v2003_v8, %v2003_v8 }
 0xc73   : > { %2011 = vadd.xlane.f32.xlu0 %v2010_v10 }
 0xc74   : > { %v2007_v35 = vsel %vm879_vm1, %v2005_v11, 0.0 }
 0xc75   : > { %2008 = vadd.xlane.f32.xlu1 %v2007_v35 }
 0xcfc   : > { %v2012_v12 = vpop.xlane.xlu0 %2011 }
 0xcfd   : > { %v2014_v32 = vmul.f32 0.03125, %v2012_v12 }
 0xcfe   : > { %v2009_v13 = vpop.xlane.xlu1 %2008 }
 0xcff   : > { %v2016_v14 = vadd.f32 1e-05, %v2014_v32  ;;  %v2013_v15 = vmul.f32 0.03125, %v2009_v13 }
 0xd01   : > { %2652 = vrsqrt.f32 %v2016_v14  ;;  %v2015_v16 = vadd.f32 1e-05, %v2013_v15 }
 0xd03   : > { %2654 = vrsqrt.f32 %v2015_v16 }
 0xd0e   : > { %v2653_v17 = vpop.eup %2652 }
 0xd0f   : > { %v2020_v19 = vmul.f32 %v2653_v17, %v2004_v6 }
 0xd10   : > { %v2655_v20 = vpop.eup %2654 }
 0xd11   : > { %v2028_v22 = vmul.f32 %v2356_v18, %v2020_v19  ;;  %v2019_v23 = vmul.f32 %v2655_v20, %v2003_v8 }
 0xd13   : > { %v2027_v24 = vmul.f32 %v2356_v18, %v2019_v23  ;;  %v2036_v25 = vadd.f32 %v2357_v21, %v2028_v22 }
 0xd15   : > { %v2035_v26 = vadd.f32 %v2357_v21, %v2027_v24  ;;  %2038 = vst.msk [vmem:[%s3228_s6 + $0x8] sm:$0xff] %vm879_vm1, %v2036_v25 }
 0xd17   : > { %2037 = vst.msk [vmem:[%s3228_s6] sm:$0xff] %vm879_vm1, %v2035_v26 }
 0xd18   : > { %2777 = shalt.err (!%p2774_p9)
}
 0xd19   : > { %s2778_s6 = scalar_lea.hbm %s3408_s4, 256  ;;  %s2782_s1 = scalar_lea.hbm %s3571_s29, 512 }
 0xd1a   : > { %p2779_p1 = scmp.ne.s32.totalorder %s3408_s4, %s2778_s6  ;;  %p2783_p0 = scmp.lt.s32.totalorder %s3408_s4, %s3571_s29 }
 0xd1b   : > { %p2784_p6 = scmp.lt.s32.totalorder %s2782_s1, %s2778_s6 }
 0xd1c   : > { %p2780_p10 = pnand %p2779_p1, %p3572_p3 }
 0xd1d   : > { %p2785_p5 = por %p2784_p6, %p2783_p0 }
 0xd1e   : > { %p2781_p13 = pneg %p2780_p10 }
 0xd20   : > { %p2786_p11 = pnand %p2785_p5, %p2781_p13 }
 0xd22   : > { %2789 = shalt.err (!%p2786_p11)
}
 0xd23   : > { %s2891_s17 = smov 128   ;;  %s2892_s7 = smov 8  }
 0xd24   : > { %2518 = dma.vmem_to_hbm [thread:$0]  (%p3572_p3), %s3410_s9, 256, %s3408_s4, %s2040_s20, %s2891_s17, %s2891_s17, %s2892_s7  }
 0xd25 PF: > { %s3573_s26 = sld [smem:[#allocation21_spill]] }
 0xd26   : > { %s3574_s19 = sld [smem:[#allocation16_spill]] }
 0xd27   : > { %s3575_s14 = sld [smem:[#allocation23_spill]] }
 0xd2b   : > { %p2543_p7 = scmp.ge.s32.totalorder %s3573_s26, 2 }
 0xd2c   : > { %s2068_s3 = sand.u32 1, %s3574_s19  }
 0xd2d   : > { %p3576_p8 = scmp.ne.s32.totalorder %s3575_s14, 0  ;;  %s2069_s0 = scalar_lea.sflag [#allocation4], %s2068_s3 }
 0xd2f   : > { %p2535_p12 = pnand %p2543_p7, %p3576_p8 }
 0xd31   : > { %p2536_p2 = pneg %p2535_p12 }
 0xd33   : > { %2839 = dma.done.wait (%p2536_p2), %s2069_s0, 256  }
 0xd34   : > { %2841 = vsyncadd (%p2536_p2), %s2069_s0, 4294967040  ;;  %s36_s28 = sadd.s32 1, %s3573_s26   ;;  %s3577_s15 = sld [smem:[#allocation17_spill]] }
 0xd35   : > { %p33_p4 = scmp.ge.s32.totalorder %s36_s28, 6   ;;  %s3578_s23 = sld [smem:[#allocation26_spill]] }
 0xd36   : > { %s3579_s24 = sld [smem:[#allocation19_spill]]  ;;  %s3583_s21 = smov %s2848_s22 }
 0xd37   : > { %s3580_s25 = sld [smem:[#allocation20_spill]]  ;;  %35 = sbr.rel (!%p33_p4) target bundleno = 27 (0x1b), region = 190 }
 0xd38   : > { %s3581_s26 = sld [smem:[#allocation24_spill]] }
 0xd39   : > { %s3582_s27 = sld [smem:[#allocation25_spill]] }
 0xd3a   : > { %s3584_s22 = smov %s3577_s15 }
 0xd3c   :  { %2074 = vsyncpa [#allocation3], 1 }
 0xd3d   :  { %2076 = vsyncpa [#allocation3 + $0x1], 1 }
 0xd3e   :  { %2077 = vsyncpa [#allocation6], 1 }
 0xd3f   :  { %2079 = vsyncpa [#allocation6 + $0x1], 1 }
 0xd40   :  { %2080 = vsyncpa [#allocation9], 1 }
 0xd41   :  { %2081 = vsyncpa [#allocation4], 1 }
 0xd42   :  { %2083 = vsyncpa [#allocation4 + $0x1], 1 }

</bundles_post_ra>
